<compile_context>
chip_gen: v7x
topology: tpu7x:2x2x1
jax: 0.10.0
libtpu: 0.0.40
codegen_flags: <defaults>
</compile_context>

<pallas_src>
import functools

import jax
import jax.numpy as jnp
from jax.experimental import pallas as pl
from jax.experimental.pallas import tpu as pltpu

MASK_VALUE = -1e30  # large-negative finite (avoids -inf + -inf / NaN issues)


# ----------------------------------------------------------------------------
# Pallas kernels
# ----------------------------------------------------------------------------
def _layer_norm(x, w, b, eps=1e-5):
    mu = jnp.mean(x, axis=-1, keepdims=True)
    var = jnp.mean((x - mu) ** 2, axis=-1, keepdims=True)
    return (x - mu) * jax.lax.rsqrt(var + eps) * w + b


def opt_layer_kernel(hs_ref, mask_ref,
                     ln1w_ref, ln1b_ref,
                     wq_ref, bq_ref, wk_ref, bk_ref, wv_ref, bv_ref,
                     wo_ref, bo_ref,
                     ln2w_ref, ln2b_ref,
                     w1_ref, b1_ref, w2_ref, b2_ref,
                     out_ref,
                     *, num_heads, head_dim):
    S = hs_ref.shape[1]
    H = hs_ref.shape[2]
    scaling = 1.0 / float(head_dim) ** 0.5

    hs = hs_ref[...].reshape(S, H)                       # (S, H) f32 residual

    # ---- self-attention (pre-LayerNorm) ------------------------------------
    x = _layer_norm(hs, ln1w_ref[...], ln1b_ref[...])
    xb = x.astype(jnp.bfloat16)

    q = jnp.dot(xb, wq_ref[...], preferred_element_type=jnp.float32) + bq_ref[...]
    k = jnp.dot(xb, wk_ref[...], preferred_element_type=jnp.float32) + bk_ref[...]
    v = jnp.dot(xb, wv_ref[...], preferred_element_type=jnp.float32) + bv_ref[...]

    # Head-major layout (num_heads, S, head_dim) -> one batched MXU stream for
    # all heads (no per-head Python loop, no 8-lane slices).
    q3 = pltpu.einshape("shd->hsd", q.reshape(S, num_heads, head_dim))
    k3 = pltpu.einshape("shd->hsd", k.reshape(S, num_heads, head_dim))
    v3 = pltpu.einshape("shd->hsd", v.reshape(S, num_heads, head_dim))

    s = jnp.einsum('hqd,hkd->hqk',
                   q3.astype(jnp.bfloat16), k3.astype(jnp.bfloat16),
                   preferred_element_type=jnp.float32) * scaling

    # Causal + key-padding mask generated in-kernel (pure index arithmetic,
    # no (B,S,S) HBM traffic).
    row = jax.lax.broadcasted_iota(jnp.int32, (S, S), 0)
    col = jax.lax.broadcasted_iota(jnp.int32, (S, S), 1)
    key_ok = mask_ref[...].reshape(S) > 0.5              # (S,) padding mask
    allowed = jnp.logical_and(col <= row, key_ok[None, :])
    s = jnp.where(allowed[None, :, :], s, MASK_VALUE)

    m = jnp.max(s, axis=-1, keepdims=True)
    p = jnp.exp(s - m)
    denom = jnp.sum(p, axis=-1, keepdims=True)
    p = p * pl.reciprocal(denom, approx=True)            # EUP, not VPU divide

    ctx = jnp.einsum('hqk,hkd->hqd',
                     p.astype(jnp.bfloat16), v3.astype(jnp.bfloat16),
                     preferred_element_type=jnp.float32)
    ctx = pltpu.einshape("hsd->shd", ctx).reshape(S, H)  # kept in registers

    attn_out = jnp.dot(ctx.astype(jnp.bfloat16), wo_ref[...],
                       preferred_element_type=jnp.float32) + bo_ref[...]
    hs = hs + attn_out

    # ---- feed-forward (pre-LayerNorm, ReLU) --------------------------------
    y = _layer_norm(hs, ln2w_ref[...], ln2b_ref[...]).astype(jnp.bfloat16)
    h1 = jnp.maximum(
        jnp.dot(y, w1_ref[...], preferred_element_type=jnp.float32) + b1_ref[...],
        0.0)
    h2 = jnp.dot(h1.astype(jnp.bfloat16), w2_ref[...],
                 preferred_element_type=jnp.float32) + b2_ref[...]
    out_ref[...] = (hs + h2).reshape(1, S, H)


def final_ln_kernel(hs_ref, w_ref, b_ref, out_ref):
    out_ref[...] = _layer_norm(hs_ref[...], w_ref[...], b_ref[...])


# ----------------------------------------------------------------------------
# Wrappers
# ----------------------------------------------------------------------------
def run_opt_layer(hs, attn_mask, p, num_heads, head_dim):
    """One OPT decoder layer.  Grid over batch ('parallel' -> both v7x TCs).

    Weights use a constant index_map so they are DMA'd to VMEM once and stay
    resident across the batch grid; activations are blocked per batch element.
    The layer output aliases the hidden_states input (residual stream updated
    in place, no extra (B,S,H) HBM allocation per layer).
    """
    B, S, H = hs.shape
    F = p['w1'].shape[1]
    assert num_heads * head_dim == H

    def rep2(shape):  # replicated (weight/bias) 2-D operand
        return pl.BlockSpec(shape, lambda b: (0, 0))

    kernel = functools.partial(opt_layer_kernel,
                               num_heads=num_heads, head_dim=head_dim)
    return pl.pallas_call(
        kernel,
        out_shape=jax.ShapeDtypeStruct((B, S, H), jnp.float32),
        grid=(B,),
        in_specs=[
            pl.BlockSpec((1, S, H), lambda b: (b, 0, 0)),   # hidden_states
            pl.BlockSpec((1, 1, S), lambda b: (b, 0, 0)),   # (B,1,S) pad mask
            rep2((1, H)), rep2((1, H)),                     # ln1 w, b
            rep2((H, H)), rep2((1, H)),                     # wq, bq
            rep2((H, H)), rep2((1, H)),                     # wk, bk
            rep2((H, H)), rep2((1, H)),                     # wv, bv
            rep2((H, H)), rep2((1, H)),                     # wo, bo
            rep2((1, H)), rep2((1, H)),                     # ln2 w, b
            rep2((H, F)), rep2((1, F)),                     # fc1
            rep2((F, H)), rep2((1, H)),                     # fc2
        ],
        out_specs=pl.BlockSpec((1, S, H), lambda b: (b, 0, 0)),
        input_output_aliases={0: 0},
        compiler_params=pltpu.CompilerParams(
            dimension_semantics=("parallel",)),
    )(hs, attn_mask,
      p['ln1_w'], p['ln1_b'],
      p['wq'], p['bq'], p['wk'], p['bk'], p['wv'], p['bv'],
      p['wo'], p['bo'],
      p['ln2_w'], p['ln2_b'],
      p['w1'], p['b1'], p['w2'], p['b2'])


def run_final_layer_norm(hs, w, b):
    vmem = pl.BlockSpec(memory_space=pltpu.MemorySpace.VMEM)
    return pl.pallas_call(
        final_ln_kernel,
        out_shape=jax.ShapeDtypeStruct(hs.shape, jnp.float32),
        in_specs=[vmem, vmem, vmem],
        out_specs=vmem,
    )(hs, w, b)


# ----------------------------------------------------------------------------
# Deterministic parameter init (matches module __init__ shapes; synthetic)
# ----------------------------------------------------------------------------
def init_params(key, cfg):
    H = cfg['hidden_size']
    F = cfg['ffn_dim']
    V = cfg['vocab_size']
    P = cfg['max_position_embeddings']

    def normal(k, shape, dtype=jnp.float32):
        return (0.02 * jax.random.normal(k, shape, dtype=jnp.float32)).astype(dtype)

    keys = jax.random.split(key, 2 + 6 * cfg['num_layers'])
    ki = iter(keys)

    embed_tokens = normal(next(ki), (V, H))
    embed_tokens = embed_tokens.at[cfg['pad_token_id']].set(0.0)  # padding_idx zeroed
    embed_positions = normal(next(ki), (P + 2, H))                # OPT offset = 2

    layers = []
    for _ in range(cfg['num_layers']):
        layers.append(dict(
            ln1_w=jnp.ones((1, H), jnp.float32), ln1_b=jnp.zeros((1, H), jnp.float32),
            wq=normal(next(ki), (H, H), jnp.bfloat16), bq=jnp.zeros((1, H), jnp.float32),
            wk=normal(next(ki), (H, H), jnp.bfloat16), bk=jnp.zeros((1, H), jnp.float32),
            wv=normal(next(ki), (H, H), jnp.bfloat16), bv=jnp.zeros((1, H), jnp.float32),
            wo=normal(next(ki), (H, H), jnp.bfloat16), bo=jnp.zeros((1, H), jnp.float32),
            ln2_w=jnp.ones((1, H), jnp.float32), ln2_b=jnp.zeros((1, H), jnp.float32),
            w1=normal(next(ki), (H, F), jnp.bfloat16), b1=jnp.zeros((1, F), jnp.float32),
            w2=normal(next(ki), (F, H), jnp.bfloat16), b2=jnp.zeros((1, H), jnp.float32),
        ))

    return dict(embed_tokens=embed_tokens,
                embed_positions=embed_positions,
                layers=layers,
                final_ln_w=jnp.ones((1, H), jnp.float32),
                final_ln_b=jnp.zeros((1, H), jnp.float32))


# ----------------------------------------------------------------------------
# Model forward (OPTModel.forward -> OPTDecoder.forward)
# ----------------------------------------------------------------------------
def opt_model_forward(input_ids, params, cfg):
    B, S = input_ids.shape

    # token embeddings (word_embed_proj_dim == hidden_size -> no project_in/out;
    # single hidden size -> block_proj are all Identity)
    inputs_embeds = jnp.take(params['embed_tokens'], input_ids, axis=0)  # (B,S,H)

    # default attention_mask = ones (forward called without attention_mask)
    attention_mask = jnp.ones((B, S), dtype=jnp.float32)

    # OPTLearnedPositionalEmbedding: positions = cumsum(mask)*mask - 1, offset 2
    positions = (jnp.cumsum(attention_mask, axis=1)
                 * attention_mask).astype(jnp.int32) - 1
    pos_embeds = jnp.take(params['embed_positions'], positions + 2, axis=0)  # (B,S,H)

    hidden_states = (inputs_embeds + pos_embeds).astype(jnp.float32)

    # Only the (B,S) padding mask crosses into the kernels; causal part is
    # generated in-kernel with iota.
    pad_mask = attention_mask.reshape(B, 1, S)

    # TODO(synk): dropout / layerdrop / output_attentions / output_hidden_states
    # are inference no-ops here (p=0.0, flags False).
    for layer_p in params['layers']:
        hidden_states = run_opt_layer(hidden_states, pad_mask, layer_p,
                                      cfg['num_heads'], cfg['head_dim'])

    hidden_states = run_final_layer_norm(hidden_states,
                                         params['final_ln_w'],
                                         params['final_ln_b'])
    return hidden_states


# ----------------------------------------------------------------------------
if __name__ == "__main__":
    cfg = dict(
        vocab_size=64,
        hidden_size=32,            # word_embed_proj_dim == hidden_size
        head_dim=8,
        num_heads=4,
        ffn_dim=64,
        num_layers=2,              # num_blocks=2, layers_per_block=[1,1], no sharing
        max_position_embeddings=32,
        pad_token_id=1,
    )
    assert cfg['num_heads'] * cfg['head_dim'] == cfg['hidden_size']

    key = jax.random.PRNGKey(0)
    k_param, k_ids = jax.random.split(key)
    params = init_params(k_param, cfg)

    B, S = 2, 8
    input_ids = jax.random.randint(k_ids, (B, S), 0, cfg['vocab_size'],
                                   dtype=jnp.int32)

    fwd = jax.jit(functools.partial(opt_model_forward, cfg=cfg))
    out = fwd(input_ids, params)
    out = jax.block_until_ready(out)
    assert out.shape == (B, S, cfg['hidden_size'])
    print("KERNEL_OK")
</pallas_src>

<mosaic_0001>
module attributes {stable_mosaic.version = 11 : i64} {
  func.func @opt_layer_kernel(%arg0: i32, %arg1: memref<1x8x32xf32, #tpu.memory_space<vmem>>, %arg2: memref<1x1x8xf32, #tpu.memory_space<vmem>>, %arg3: memref<1x32xf32, #tpu.memory_space<vmem>>, %arg4: memref<1x32xf32, #tpu.memory_space<vmem>>, %arg5: memref<32x32xbf16, #tpu.memory_space<vmem>>, %arg6: memref<1x32xf32, #tpu.memory_space<vmem>>, %arg7: memref<32x32xbf16, #tpu.memory_space<vmem>>, %arg8: memref<1x32xf32, #tpu.memory_space<vmem>>, %arg9: memref<32x32xbf16, #tpu.memory_space<vmem>>, %arg10: memref<1x32xf32, #tpu.memory_space<vmem>>, %arg11: memref<32x32xbf16, #tpu.memory_space<vmem>>, %arg12: memref<1x32xf32, #tpu.memory_space<vmem>>, %arg13: memref<1x32xf32, #tpu.memory_space<vmem>>, %arg14: memref<1x32xf32, #tpu.memory_space<vmem>>, %arg15: memref<32x64xbf16, #tpu.memory_space<vmem>>, %arg16: memref<1x64xf32, #tpu.memory_space<vmem>>, %arg17: memref<64x32xbf16, #tpu.memory_space<vmem>>, %arg18: memref<1x32xf32, #tpu.memory_space<vmem>>, %arg19: memref<1x8x32xf32, #tpu.memory_space<vmem>>) attributes {dimension_semantics = [#tpu.dimension_semantics<parallel>], iteration_bounds = array<i64: 2>, scalar_prefetch = 0 : i64, scratch_operands = 0 : i64, tpu.core_type = #tpu.core_type<tc>, window_params = [{transform_indices = @transform_0, window_bounds = array<i64: 1, 8, 32>}, {transform_indices = @transform_1, window_bounds = array<i64: 1, 1, 8>}, {pipeline_mode = #tpu.pipeline_mode<synchronous>, transform_indices = @transform_2, window_bounds = array<i64: 1, 32>}, {pipeline_mode = #tpu.pipeline_mode<synchronous>, transform_indices = @transform_3, window_bounds = array<i64: 1, 32>}, {pipeline_mode = #tpu.pipeline_mode<synchronous>, transform_indices = @transform_4, window_bounds = array<i64: 32, 32>}, {pipeline_mode = #tpu.pipeline_mode<synchronous>, transform_indices = @transform_5, window_bounds = array<i64: 1, 32>}, {pipeline_mode = #tpu.pipeline_mode<synchronous>, transform_indices = @transform_6, window_bounds = array<i64: 32, 32>}, {pipeline_mode = #tpu.pipeline_mode<synchronous>, transform_indices = @transform_7, window_bounds = array<i64: 1, 32>}, {pipeline_mode = #tpu.pipeline_mode<synchronous>, transform_indices = @transform_8, window_bounds = array<i64: 32, 32>}, {pipeline_mode = #tpu.pipeline_mode<synchronous>, transform_indices = @transform_9, window_bounds = array<i64: 1, 32>}, {pipeline_mode = #tpu.pipeline_mode<synchronous>, transform_indices = @transform_10, window_bounds = array<i64: 32, 32>}, {pipeline_mode = #tpu.pipeline_mode<synchronous>, transform_indices = @transform_11, window_bounds = array<i64: 1, 32>}, {pipeline_mode = #tpu.pipeline_mode<synchronous>, transform_indices = @transform_12, window_bounds = array<i64: 1, 32>}, {pipeline_mode = #tpu.pipeline_mode<synchronous>, transform_indices = @transform_13, window_bounds = array<i64: 1, 32>}, {pipeline_mode = #tpu.pipeline_mode<synchronous>, transform_indices = @transform_14, window_bounds = array<i64: 32, 64>}, {pipeline_mode = #tpu.pipeline_mode<synchronous>, transform_indices = @transform_15, window_bounds = array<i64: 1, 64>}, {pipeline_mode = #tpu.pipeline_mode<synchronous>, transform_indices = @transform_16, window_bounds = array<i64: 64, 32>}, {pipeline_mode = #tpu.pipeline_mode<synchronous>, transform_indices = @transform_17, window_bounds = array<i64: 1, 32>}, {transform_indices = @transform_18, window_bounds = array<i64: 1, 8, 32>}]} {
    %c0 = arith.constant 0 : index
    %c0_0 = arith.constant 0 : index
    %c0_1 = arith.constant 0 : index
    %0 = vector.load %arg1[%c0, %c0_0, %c0_1] : memref<1x8x32xf32, #tpu.memory_space<vmem>>, vector<1x8x32xf32>
    %1 = vector.shape_cast %0 : vector<1x8x32xf32> to vector<8x32xf32>
    %c0_2 = arith.constant 0 : index
    %c0_3 = arith.constant 0 : index
    %2 = vector.load %arg3[%c0_2, %c0_3] : memref<1x32xf32, #tpu.memory_space<vmem>>, vector<1x32xf32>
    %c0_4 = arith.constant 0 : index
    %c0_5 = arith.constant 0 : index
    %3 = vector.load %arg4[%c0_4, %c0_5] : memref<1x32xf32, #tpu.memory_space<vmem>>, vector<1x32xf32>
    %cst = arith.constant dense<0.000000e+00> : vector<8xf32>
    %4 = vector.multi_reduction <add>, %1, %cst [1] : vector<8x32xf32> to vector<8xf32>
    %5 = vector.shape_cast %4 : vector<8xf32> to vector<8x1xf32>
    %cst_6 = arith.constant 3.200000e+01 : f32
    %6 = vector.broadcast %cst_6 : f32 to vector<8x1xf32>
    %7 = arith.divf %5, %6 : vector<8x1xf32>
    %8 = vector.broadcast %7 : vector<8x1xf32> to vector<8x32xf32>
    %9 = arith.subf %1, %8 : vector<8x32xf32>
    %10 = arith.mulf %9, %9 : vector<8x32xf32>
    %cst_7 = arith.constant dense<0.000000e+00> : vector<8xf32>
    %11 = vector.multi_reduction <add>, %10, %cst_7 [1] : vector<8x32xf32> to vector<8xf32>
    %12 = vector.shape_cast %11 : vector<8xf32> to vector<8x1xf32>
    %cst_8 = arith.constant 3.200000e+01 : f32
    %13 = vector.broadcast %cst_8 : f32 to vector<8x1xf32>
    %14 = arith.divf %12, %13 : vector<8x1xf32>
    %15 = vector.broadcast %7 : vector<8x1xf32> to vector<8x32xf32>
    %16 = arith.subf %1, %15 : vector<8x32xf32>
    %cst_9 = arith.constant 9.99999974E-6 : f32
    %17 = vector.broadcast %cst_9 : f32 to vector<8x1xf32>
    %18 = arith.addf %14, %17 : vector<8x1xf32>
    %19 = math.rsqrt %18 : vector<8x1xf32>
    %20 = vector.broadcast %19 : vector<8x1xf32> to vector<8x32xf32>
    %21 = arith.mulf %16, %20 : vector<8x32xf32>
    %22 = vector.broadcast %2 : vector<1x32xf32> to vector<8x32xf32>
    %23 = arith.mulf %21, %22 : vector<8x32xf32>
    %24 = vector.broadcast %3 : vector<1x32xf32> to vector<8x32xf32>
    %25 = arith.addf %23, %24 : vector<8x32xf32>
    %26 = arith.truncf %25 : vector<8x32xf32> to vector<8x32xbf16>
    %c0_10 = arith.constant 0 : index
    %c0_11 = arith.constant 0 : index
    %27 = vector.load %arg5[%c0_10, %c0_11] : memref<32x32xbf16, #tpu.memory_space<vmem>>, vector<32x32xbf16>
    %cst_12 = arith.constant dense<0.000000e+00> : vector<8x32xf32>
    %28 = tpu.matmul %26, %27, %cst_12 {dimension_numbers = #tpu.dot_dimension_numbers<[1], [0], [0], [1], [0, 0, 1, 1], [], []>} : vector<8x32xbf16>, vector<32x32xbf16>, vector<8x32xf32> -> vector<8x32xf32>
    %c0_13 = arith.constant 0 : index
    %c0_14 = arith.constant 0 : index
    %29 = vector.load %arg6[%c0_13, %c0_14] : memref<1x32xf32, #tpu.memory_space<vmem>>, vector<1x32xf32>
    %30 = vector.broadcast %29 : vector<1x32xf32> to vector<8x32xf32>
    %31 = arith.addf %28, %30 : vector<8x32xf32>
    %c0_15 = arith.constant 0 : index
    %c0_16 = arith.constant 0 : index
    %32 = vector.load %arg7[%c0_15, %c0_16] : memref<32x32xbf16, #tpu.memory_space<vmem>>, vector<32x32xbf16>
    %cst_17 = arith.constant dense<0.000000e+00> : vector<8x32xf32>
    %33 = tpu.matmul %26, %32, %cst_17 {dimension_numbers = #tpu.dot_dimension_numbers<[1], [0], [0], [1], [0, 0, 1, 1], [], []>} : vector<8x32xbf16>, vector<32x32xbf16>, vector<8x32xf32> -> vector<8x32xf32>
    %c0_18 = arith.constant 0 : index
    %c0_19 = arith.constant 0 : index
    %34 = vector.load %arg8[%c0_18, %c0_19] : memref<1x32xf32, #tpu.memory_space<vmem>>, vector<1x32xf32>
    %35 = vector.broadcast %34 : vector<1x32xf32> to vector<8x32xf32>
    %36 = arith.addf %33, %35 : vector<8x32xf32>
    %c0_20 = arith.constant 0 : index
    %c0_21 = arith.constant 0 : index
    %37 = vector.load %arg9[%c0_20, %c0_21] : memref<32x32xbf16, #tpu.memory_space<vmem>>, vector<32x32xbf16>
    %cst_22 = arith.constant dense<0.000000e+00> : vector<8x32xf32>
    %38 = tpu.matmul %26, %37, %cst_22 {dimension_numbers = #tpu.dot_dimension_numbers<[1], [0], [0], [1], [0, 0, 1, 1], [], []>} : vector<8x32xbf16>, vector<32x32xbf16>, vector<8x32xf32> -> vector<8x32xf32>
    %c0_23 = arith.constant 0 : index
    %c0_24 = arith.constant 0 : index
    %39 = vector.load %arg10[%c0_23, %c0_24] : memref<1x32xf32, #tpu.memory_space<vmem>>, vector<1x32xf32>
    %40 = vector.broadcast %39 : vector<1x32xf32> to vector<8x32xf32>
    %41 = arith.addf %38, %40 : vector<8x32xf32>
    %42 = vector.shape_cast %31 : vector<8x32xf32> to vector<8x4x8xf32>
    %43 = tpu.transpose %42, [1, 0, 2] : vector<8x4x8xf32> -> vector<4x8x8xf32>
    %44 = vector.shape_cast %36 : vector<8x32xf32> to vector<8x4x8xf32>
    %45 = tpu.transpose %44, [1, 0, 2] : vector<8x4x8xf32> -> vector<4x8x8xf32>
    %46 = vector.shape_cast %41 : vector<8x32xf32> to vector<8x4x8xf32>
    %47 = tpu.transpose %46, [1, 0, 2] : vector<8x4x8xf32> -> vector<4x8x8xf32>
    %48 = arith.truncf %43 : vector<4x8x8xf32> to vector<4x8x8xbf16>
    %49 = arith.truncf %45 : vector<4x8x8xf32> to vector<4x8x8xbf16>
    "tpu.trace_start"() <{level = 10 : i32, message = "hqd,hkd->hqk"}> : () -> ()
    %cst_25 = arith.constant dense<0.000000e+00> : vector<4x8x8xf32>
    %50 = tpu.matmul %48, %49, %cst_25 {dimension_numbers = #tpu.dot_dimension_numbers<[2], [2], [1], [1], [0, 0, 0, 1, 1, 1], [0], [0]>} : vector<4x8x8xbf16>, vector<4x8x8xbf16>, vector<4x8x8xf32> -> vector<4x8x8xf32>
    "tpu.trace_stop"() : () -> ()
    %cst_26 = arith.constant 0.353553385 : f32
    %51 = vector.broadcast %cst_26 : f32 to vector<4x8x8xf32>
    %52 = arith.mulf %50, %51 : vector<4x8x8xf32>
    %53 = tpu.iota {dimensions = array<i32: 0>} : vector<8x8xi32>
    %54 = tpu.iota {dimensions = array<i32: 1>} : vector<8x8xi32>
    %c0_27 = arith.constant 0 : index
    %c0_28 = arith.constant 0 : index
    %c0_29 = arith.constant 0 : index
    %55 = vector.load %arg2[%c0_27, %c0_28, %c0_29] : memref<1x1x8xf32, #tpu.memory_space<vmem>>, vector<1x1x8xf32>
    %56 = vector.shape_cast %55 : vector<1x1x8xf32> to vector<8xf32>
    %cst_30 = arith.constant 5.000000e-01 : f32
    %57 = vector.broadcast %cst_30 : f32 to vector<8xf32>
    %58 = arith.cmpf ogt, %56, %57 : vector<8xf32>
    %59 = arith.cmpi sle, %54, %53 : vector<8x8xi32>
    %60 = vector.shape_cast %58 : vector<8xi1> to vector<1x8xi1>
    %61 = vector.broadcast %60 : vector<1x8xi1> to vector<8x8xi1>
    %62 = arith.andi %59, %61 : vector<8x8xi1>
    %63 = vector.shape_cast %62 : vector<8x8xi1> to vector<1x8x8xi1>
    %cst_31 = arith.constant -1.000000e+30 : f32
    %64 = vector.shape_cast %63 : vector<1x8x8xi1> to vector<1x8x8xi1>
    %65 = vector.broadcast %64 : vector<1x8x8xi1> to vector<4x8x8xi1>
    %66 = vector.broadcast %cst_31 : f32 to vector<4x8x8xf32>
    %67 = arith.select %65, %52, %66 : vector<4x8x8xi1>, vector<4x8x8xf32>
    %cst_32 = arith.constant dense<0xFF800000> : vector<4x8xf32>
    %68 = vector.multi_reduction <maximumf>, %67, %cst_32 [2] : vector<4x8x8xf32> to vector<4x8xf32>
    %69 = vector.shape_cast %68 : vector<4x8xf32> to vector<4x8x1xf32>
    %70 = vector.broadcast %69 : vector<4x8x1xf32> to vector<4x8x8xf32>
    %71 = arith.subf %67, %70 : vector<4x8x8xf32>
    %72 = math.exp %71 : vector<4x8x8xf32>
    %cst_33 = arith.constant dense<0.000000e+00> : vector<4x8xf32>
    %73 = vector.multi_reduction <add>, %72, %cst_33 [2] : vector<4x8x8xf32> to vector<4x8xf32>
    %74 = vector.shape_cast %73 : vector<4x8xf32> to vector<4x8x1xf32>
    %75 = tpu.reciprocal %74 {approx = true} : vector<4x8x1xf32> -> vector<4x8x1xf32>
    %76 = vector.broadcast %75 : vector<4x8x1xf32> to vector<4x8x8xf32>
    %77 = arith.mulf %72, %76 : vector<4x8x8xf32>
    %78 = arith.truncf %77 : vector<4x8x8xf32> to vector<4x8x8xbf16>
    %79 = arith.truncf %47 : vector<4x8x8xf32> to vector<4x8x8xbf16>
    "tpu.trace_start"() <{level = 10 : i32, message = "hqk,hkd->hqd"}> : () -> ()
    %cst_34 = arith.constant dense<0.000000e+00> : vector<4x8x8xf32>
    %80 = tpu.matmul %78, %79, %cst_34 {dimension_numbers = #tpu.dot_dimension_numbers<[2], [1], [1], [2], [0, 0, 0, 1, 1, 2], [0], [0]>} : vector<4x8x8xbf16>, vector<4x8x8xbf16>, vector<4x8x8xf32> -> vector<4x8x8xf32>
    "tpu.trace_stop"() : () -> ()
    %81 = tpu.transpose %80, [1, 0, 2] : vector<4x8x8xf32> -> vector<8x4x8xf32>
    %82 = vector.shape_cast %81 : vector<8x4x8xf32> to vector<8x32xf32>
    %83 = arith.truncf %82 : vector<8x32xf32> to vector<8x32xbf16>
    %c0_35 = arith.constant 0 : index
    %c0_36 = arith.constant 0 : index
    %84 = vector.load %arg11[%c0_35, %c0_36] : memref<32x32xbf16, #tpu.memory_space<vmem>>, vector<32x32xbf16>
    %cst_37 = arith.constant dense<0.000000e+00> : vector<8x32xf32>
    %85 = tpu.matmul %83, %84, %cst_37 {dimension_numbers = #tpu.dot_dimension_numbers<[1], [0], [0], [1], [0, 0, 1, 1], [], []>} : vector<8x32xbf16>, vector<32x32xbf16>, vector<8x32xf32> -> vector<8x32xf32>
    %c0_38 = arith.constant 0 : index
    %c0_39 = arith.constant 0 : index
    %86 = vector.load %arg12[%c0_38, %c0_39] : memref<1x32xf32, #tpu.memory_space<vmem>>, vector<1x32xf32>
    %87 = vector.broadcast %86 : vector<1x32xf32> to vector<8x32xf32>
    %88 = arith.addf %85, %87 : vector<8x32xf32>
    %89 = arith.addf %1, %88 : vector<8x32xf32>
    %c0_40 = arith.constant 0 : index
    %c0_41 = arith.constant 0 : index
    %90 = vector.load %arg13[%c0_40, %c0_41] : memref<1x32xf32, #tpu.memory_space<vmem>>, vector<1x32xf32>
    %c0_42 = arith.constant 0 : index
    %c0_43 = arith.constant 0 : index
    %91 = vector.load %arg14[%c0_42, %c0_43] : memref<1x32xf32, #tpu.memory_space<vmem>>, vector<1x32xf32>
    %cst_44 = arith.constant dense<0.000000e+00> : vector<8xf32>
    %92 = vector.multi_reduction <add>, %89, %cst_44 [1] : vector<8x32xf32> to vector<8xf32>
    %93 = vector.shape_cast %92 : vector<8xf32> to vector<8x1xf32>
    %cst_45 = arith.constant 3.200000e+01 : f32
    %94 = vector.broadcast %cst_45 : f32 to vector<8x1xf32>
    %95 = arith.divf %93, %94 : vector<8x1xf32>
    %96 = vector.broadcast %95 : vector<8x1xf32> to vector<8x32xf32>
    %97 = arith.subf %89, %96 : vector<8x32xf32>
    %98 = arith.mulf %97, %97 : vector<8x32xf32>
    %cst_46 = arith.constant dense<0.000000e+00> : vector<8xf32>
    %99 = vector.multi_reduction <add>, %98, %cst_46 [1] : vector<8x32xf32> to vector<8xf32>
    %100 = vector.shape_cast %99 : vector<8xf32> to vector<8x1xf32>
    %cst_47 = arith.constant 3.200000e+01 : f32
    %101 = vector.broadcast %cst_47 : f32 to vector<8x1xf32>
    %102 = arith.divf %100, %101 : vector<8x1xf32>
    %103 = vector.broadcast %95 : vector<8x1xf32> to vector<8x32xf32>
    %104 = arith.subf %89, %103 : vector<8x32xf32>
    %cst_48 = arith.constant 9.99999974E-6 : f32
    %105 = vector.broadcast %cst_48 : f32 to vector<8x1xf32>
    %106 = arith.addf %102, %105 : vector<8x1xf32>
    %107 = math.rsqrt %106 : vector<8x1xf32>
    %108 = vector.broadcast %107 : vector<8x1xf32> to vector<8x32xf32>
    %109 = arith.mulf %104, %108 : vector<8x32xf32>
    %110 = vector.broadcast %90 : vector<1x32xf32> to vector<8x32xf32>
    %111 = arith.mulf %109, %110 : vector<8x32xf32>
    %112 = vector.broadcast %91 : vector<1x32xf32> to vector<8x32xf32>
    %113 = arith.addf %111, %112 : vector<8x32xf32>
    %114 = arith.truncf %113 : vector<8x32xf32> to vector<8x32xbf16>
    %c0_49 = arith.constant 0 : index
    %c0_50 = arith.constant 0 : index
    %115 = vector.load %arg15[%c0_49, %c0_50] : memref<32x64xbf16, #tpu.memory_space<vmem>>, vector<32x64xbf16>
    %cst_51 = arith.constant dense<0.000000e+00> : vector<8x64xf32>
    %116 = tpu.matmul %114, %115, %cst_51 {dimension_numbers = #tpu.dot_dimension_numbers<[1], [0], [0], [1], [0, 0, 1, 1], [], []>} : vector<8x32xbf16>, vector<32x64xbf16>, vector<8x64xf32> -> vector<8x64xf32>
    %c0_52 = arith.constant 0 : index
    %c0_53 = arith.constant 0 : index
    %117 = vector.load %arg16[%c0_52, %c0_53] : memref<1x64xf32, #tpu.memory_space<vmem>>, vector<1x64xf32>
    %118 = vector.broadcast %117 : vector<1x64xf32> to vector<8x64xf32>
    %119 = arith.addf %116, %118 : vector<8x64xf32>
    %cst_54 = arith.constant 0.000000e+00 : f32
    %120 = vector.broadcast %cst_54 : f32 to vector<8x64xf32>
    %121 = arith.maximumf %119, %120 : vector<8x64xf32>
    %122 = arith.truncf %121 : vector<8x64xf32> to vector<8x64xbf16>
    %c0_55 = arith.constant 0 : index
    %c0_56 = arith.constant 0 : index
    %123 = vector.load %arg17[%c0_55, %c0_56] : memref<64x32xbf16, #tpu.memory_space<vmem>>, vector<64x32xbf16>
    %cst_57 = arith.constant dense<0.000000e+00> : vector<8x32xf32>
    %124 = tpu.matmul %122, %123, %cst_57 {dimension_numbers = #tpu.dot_dimension_numbers<[1], [0], [0], [1], [0, 0, 1, 1], [], []>} : vector<8x64xbf16>, vector<64x32xbf16>, vector<8x32xf32> -> vector<8x32xf32>
    %c0_58 = arith.constant 0 : index
    %c0_59 = arith.constant 0 : index
    %125 = vector.load %arg18[%c0_58, %c0_59] : memref<1x32xf32, #tpu.memory_space<vmem>>, vector<1x32xf32>
    %126 = vector.broadcast %125 : vector<1x32xf32> to vector<8x32xf32>
    %127 = arith.addf %124, %126 : vector<8x32xf32>
    %128 = arith.addf %89, %127 : vector<8x32xf32>
    %129 = vector.shape_cast %128 : vector<8x32xf32> to vector<1x8x32xf32>
    %c0_60 = arith.constant 0 : index
    %c0_61 = arith.constant 0 : index
    %c0_62 = arith.constant 0 : index
    %130 = vector.load %arg19[%c0_60, %c0_61, %c0_62] : memref<1x8x32xf32, #tpu.memory_space<vmem>>, vector<1x8x32xf32>
    tpu.vector_store %arg19[%c0_60, %c0_61, %c0_62], %129 {strides = array<i32>} : memref<1x8x32xf32, #tpu.memory_space<vmem>>, vector<1x8x32xf32>,
    return
  }
  func.func @transform_0(%arg0: i32) -> (i32, i32, i32) {
    %c0_i32 = arith.constant 0 : i32
    %c0_i32_0 = arith.constant 0 : i32
    %c0_i32_1 = arith.constant 0 : i32
    return %arg0, %c0_i32, %c0_i32_0 : i32, i32, i32
  }
  func.func @transform_1(%arg0: i32) -> (i32, i32, i32) {
    %c0_i32 = arith.constant 0 : i32
    %c0_i32_0 = arith.constant 0 : i32
    %c0_i32_1 = arith.constant 0 : i32
    return %arg0, %c0_i32, %c0_i32_0 : i32, i32, i32
  }
  func.func @transform_2(%arg0: i32) -> (i32, i32) {
    %c0_i32 = arith.constant 0 : i32
    %c0_i32_0 = arith.constant 0 : i32
    %c0_i32_1 = arith.constant 0 : i32
    return %c0_i32, %c0_i32_0 : i32, i32
  }
  func.func @transform_3(%arg0: i32) -> (i32, i32) {
    %c0_i32 = arith.constant 0 : i32
    %c0_i32_0 = arith.constant 0 : i32
    %c0_i32_1 = arith.constant 0 : i32
    return %c0_i32, %c0_i32_0 : i32, i32
  }
  func.func @transform_4(%arg0: i32) -> (i32, i32) {
    %c0_i32 = arith.constant 0 : i32
    %c0_i32_0 = arith.constant 0 : i32
    %c0_i32_1 = arith.constant 0 : i32
    return %c0_i32, %c0_i32_0 : i32, i32
  }
  func.func @transform_5(%arg0: i32) -> (i32, i32) {
    %c0_i32 = arith.constant 0 : i32
    %c0_i32_0 = arith.constant 0 : i32
    %c0_i32_1 = arith.constant 0 : i32
    return %c0_i32, %c0_i32_0 : i32, i32
  }
  func.func @transform_6(%arg0: i32) -> (i32, i32) {
    %c0_i32 = arith.constant 0 : i32
    %c0_i32_0 = arith.constant 0 : i32
    %c0_i32_1 = arith.constant 0 : i32
    return %c0_i32, %c0_i32_0 : i32, i32
  }
  func.func @transform_7(%arg0: i32) -> (i32, i32) {
    %c0_i32 = arith.constant 0 : i32
    %c0_i32_0 = arith.constant 0 : i32
    %c0_i32_1 = arith.constant 0 : i32
    return %c0_i32, %c0_i32_0 : i32, i32
  }
  func.func @transform_8(%arg0: i32) -> (i32, i32) {
    %c0_i32 = arith.constant 0 : i32
    %c0_i32_0 = arith.constant 0 : i32
    %c0_i32_1 = arith.constant 0 : i32
    return %c0_i32, %c0_i32_0 : i32, i32
  }
  func.func @transform_9(%arg0: i32) -> (i32, i32) {
    %c0_i32 = arith.constant 0 : i32
    %c0_i32_0 = arith.constant 0 : i32
    %c0_i32_1 = arith.constant 0 : i32
    return %c0_i32, %c0_i32_0 : i32, i32
  }
  func.func @transform_10(%arg0: i32) -> (i32, i32) {
    %c0_i32 = arith.constant 0 : i32
    %c0_i32_0 = arith.constant 0 : i32
    %c0_i32_1 = arith.constant 0 : i32
    return %c0_i32, %c0_i32_0 : i32, i32
  }
  func.func @transform_11(%arg0: i32) -> (i32, i32) {
    %c0_i32 = arith.constant 0 : i32
    %c0_i32_0 = arith.constant 0 : i32
    %c0_i32_1 = arith.constant 0 : i32
    return %c0_i32, %c0_i32_0 : i32, i32
  }
  func.func @transform_12(%arg0: i32) -> (i32, i32) {
    %c0_i32 = arith.constant 0 : i32
    %c0_i32_0 = arith.constant 0 : i32
    %c0_i32_1 = arith.constant 0 : i32
    return %c0_i32, %c0_i32_0 : i32, i32
  }
  func.func @transform_13(%arg0: i32) -> (i32, i32) {
    %c0_i32 = arith.constant 0 : i32
    %c0_i32_0 = arith.constant 0 : i32
    %c0_i32_1 = arith.constant 0 : i32
    return %c0_i32, %c0_i32_0 : i32, i32
  }
  func.func @transform_14(%arg0: i32) -> (i32, i32) {
    %c0_i32 = arith.constant 0 : i32
    %c0_i32_0 = arith.constant 0 : i32
    %c0_i32_1 = arith.constant 0 : i32
    return %c0_i32, %c0_i32_0 : i32, i32
  }
  func.func @transform_15(%arg0: i32) -> (i32, i32) {
    %c0_i32 = arith.constant 0 : i32
    %c0_i32_0 = arith.constant 0 : i32
    %c0_i32_1 = arith.constant 0 : i32
    return %c0_i32, %c0_i32_0 : i32, i32
  }
  func.func @transform_16(%arg0: i32) -> (i32, i32) {
    %c0_i32 = arith.constant 0 : i32
    %c0_i32_0 = arith.constant 0 : i32
    %c0_i32_1 = arith.constant 0 : i32
    return %c0_i32, %c0_i32_0 : i32, i32
  }
  func.func @transform_17(%arg0: i32) -> (i32, i32) {
    %c0_i32 = arith.constant 0 : i32
    %c0_i32_0 = arith.constant 0 : i32
    %c0_i32_1 = arith.constant 0 : i32
    return %c0_i32, %c0_i32_0 : i32, i32
  }
  func.func @transform_18(%arg0: i32) -> (i32, i32, i32) {
    %c0_i32 = arith.constant 0 : i32
    %c0_i32_0 = arith.constant 0 : i32
    %c0_i32_1 = arith.constant 0 : i32
    return %arg0, %c0_i32, %c0_i32_0 : i32, i32, i32
  }
}

module attributes {stable_mosaic.version = 11 : i64} {
  func.func @final_ln_kernel(%arg0: memref<2x8x32xf32, #tpu.memory_space<vmem>>, %arg1: memref<1x32xf32, #tpu.memory_space<vmem>>, %arg2: memref<1x32xf32, #tpu.memory_space<vmem>>, %arg3: memref<2x8x32xf32, #tpu.memory_space<vmem>>) attributes {dimension_semantics = [], scalar_prefetch = 0 : i64, scratch_operands = 0 : i64, tpu.core_type = #tpu.core_type<tc>} {
    %c0 = arith.constant 0 : index
    %c0_0 = arith.constant 0 : index
    %c0_1 = arith.constant 0 : index
    %0 = vector.load %arg0[%c0, %c0_0, %c0_1] : memref<2x8x32xf32, #tpu.memory_space<vmem>>, vector<2x8x32xf32>
    %c0_2 = arith.constant 0 : index
    %c0_3 = arith.constant 0 : index
    %1 = vector.load %arg1[%c0_2, %c0_3] : memref<1x32xf32, #tpu.memory_space<vmem>>, vector<1x32xf32>
    %c0_4 = arith.constant 0 : index
    %c0_5 = arith.constant 0 : index
    %2 = vector.load %arg2[%c0_4, %c0_5] : memref<1x32xf32, #tpu.memory_space<vmem>>, vector<1x32xf32>
    %cst = arith.constant dense<0.000000e+00> : vector<2x8xf32>
    %3 = vector.multi_reduction <add>, %0, %cst [2] : vector<2x8x32xf32> to vector<2x8xf32>
    %4 = vector.shape_cast %3 : vector<2x8xf32> to vector<2x8x1xf32>
    %cst_6 = arith.constant 3.200000e+01 : f32
    %5 = vector.broadcast %cst_6 : f32 to vector<2x8x1xf32>
    %6 = arith.divf %4, %5 : vector<2x8x1xf32>
    %7 = vector.broadcast %6 : vector<2x8x1xf32> to vector<2x8x32xf32>
    %8 = arith.subf %0, %7 : vector<2x8x32xf32>
    %9 = arith.mulf %8, %8 : vector<2x8x32xf32>
    %cst_7 = arith.constant dense<0.000000e+00> : vector<2x8xf32>
    %10 = vector.multi_reduction <add>, %9, %cst_7 [2] : vector<2x8x32xf32> to vector<2x8xf32>
    %11 = vector.shape_cast %10 : vector<2x8xf32> to vector<2x8x1xf32>
    %cst_8 = arith.constant 3.200000e+01 : f32
    %12 = vector.broadcast %cst_8 : f32 to vector<2x8x1xf32>
    %13 = arith.divf %11, %12 : vector<2x8x1xf32>
    %14 = vector.broadcast %6 : vector<2x8x1xf32> to vector<2x8x32xf32>
    %15 = arith.subf %0, %14 : vector<2x8x32xf32>
    %cst_9 = arith.constant 9.99999974E-6 : f32
    %16 = vector.broadcast %cst_9 : f32 to vector<2x8x1xf32>
    %17 = arith.addf %13, %16 : vector<2x8x1xf32>
    %18 = math.rsqrt %17 : vector<2x8x1xf32>
    %19 = vector.broadcast %18 : vector<2x8x1xf32> to vector<2x8x32xf32>
    %20 = arith.mulf %15, %19 : vector<2x8x32xf32>
    %21 = vector.shape_cast %1 : vector<1x32xf32> to vector<1x1x32xf32>
    %22 = vector.broadcast %21 : vector<1x1x32xf32> to vector<2x8x32xf32>
    %23 = arith.mulf %20, %22 : vector<2x8x32xf32>
    %24 = vector.shape_cast %2 : vector<1x32xf32> to vector<1x1x32xf32>
    %25 = vector.broadcast %24 : vector<1x1x32xf32> to vector<2x8x32xf32>
    %26 = arith.addf %23, %25 : vector<2x8x32xf32>
    %c0_10 = arith.constant 0 : index
    %c0_11 = arith.constant 0 : index
    %c0_12 = arith.constant 0 : index
    %27 = vector.load %arg3[%c0_10, %c0_11, %c0_12] : memref<2x8x32xf32, #tpu.memory_space<vmem>>, vector<2x8x32xf32>
    tpu.vector_store %arg3[%c0_10, %c0_11, %c0_12], %26 {strides = array<i32>} : memref<2x8x32xf32, #tpu.memory_space<vmem>>, vector<2x8x32xf32>,
    return
  }
}

</mosaic_0001>

<bundles_post_ra>
// kernel: opt_model_forward.5
= control target key start
LH: loop header
LB: loop body
LE: loop exit
PB: predicated region body
PF: predicated region fallthrough
CT: control target
= control target key end

     0   :  { %vm19_vm0 = vcmask 261120   ;;  %s167_s0 = inlined_call_operand.vmem [shape: f32[2,8,32], index: 0, kind: input, shape index: {}]   ;;  %s168_s1 = inlined_call_operand.vmem [shape: f32[1,32], index: 1, kind: input, shape index: {}]   ;;  %s169_s2 = inlined_call_operand.vmem [shape: f32[1,32], index: 2, kind: input, shape index: {}]   ;;  %s170_s3 = inlined_call_operand.hbm [shape: f32[2,8,32], index: 3, kind: output, shape index: {}]  }
   0x1   :  { %v15_v0 = vld [vmem:[%s167_s0] sm:$0xff]  ;;  %v16_v1 = vld [vmem:[%s167_s0 + $0x8] sm:$0xff] }
   0x2   :  { %8 = vsyncpa [#allocation3], 0  ;;  %v20_v2 = vsel %vm19_vm0, %v15_v0, 0.0  ;;  %v23_v3 = vsel %vm19_vm0, %v16_v1, 0.0  ;;  %v81_v21 = vld [vmem:[%s168_s1] ss:$0 sm:$0xff] }
   0x3   :  { %21 = vadd.xlane.f32.xlu0 %v20_v2  ;;  %v82_v23 = vld [vmem:[%s169_s2] ss:$0 sm:$0xff]  ;;  %s114_s19 = smov [#allocation2]  }
   0x4   :  { %s70_s20 = sshll.u32 %s114_s19, 4  ;;  %s71_s20 = int_to_ptr.vmem [resolvable:$true] %s70_s20 }
   0x5   :  { %s90_s21 = scalar_lea.vmem %s71_s20, 256  ;;  %p95_p1 = scmp.lt.s32.totalorder %s71_s20, %s71_s20 }
   0x6   :  { %p91_p0 = scmp.ne.s32.totalorder %s71_s20, %s90_s21  ;;  %p96_p2 = scmp.lt.s32.totalorder %s90_s21, %s90_s21 }
   0x7   :  { %24 = vadd.xlane.f32.xlu0 %v23_v3 }
   0x8   :  { %p97_p3 = por %p96_p2, %p95_p1 }
   0xa   :  { %p98_p4 = pnand %p97_p3, %p91_p0 }
  0x90   :  { %v22_v4 = vpop.xlane.xlu0 %21 }
  0x91   :  { %v27_v5 = vmul.f32 0.03125, %v22_v4 }
  0x93   :  { %v29_v6 = vsub.f32 %v15_v0, %v27_v5 }
  0x94   :  { %v25_v7 = vpop.xlane.xlu0 %24 }
  0x95   :  { %v28_v8 = vmul.f32 0.03125, %v25_v7  ;;  %v31_v9 = vmul.f32 %v29_v6, %v29_v6 }
  0x97   :  { %v30_v10 = vsub.f32 %v16_v1, %v28_v8  ;;  %v33_v11 = vsel %vm19_vm0, %v31_v9, 0.0 }
  0x98   :  { %34 = vadd.xlane.f32.xlu1 %v33_v11 }
  0x99   :  { %v32_v12 = vmul.f32 %v30_v10, %v30_v10 }
  0x9b   :  { %v36_v13 = vsel %vm19_vm0, %v32_v12, 0.0 }
  0x9c   :  { %37 = vadd.xlane.f32.xlu1 %v36_v13 }
 0x125   :  { %v35_v14 = vpop.xlane.xlu1 %34 }
 0x126   :  { %v39_v15 = vmul.f32 0.03125, %v35_v14 }
 0x128   :  { %v41_v16 = vadd.f32 1e-05, %v39_v15 }
 0x129   :  { %v38_v17 = vpop.xlane.xlu1 %37 }
 0x12a   :  { %86 = vrsqrt.f32 %v41_v16  ;;  %v40_v18 = vmul.f32 0.03125, %v38_v17 }
 0x12c   :  { %v42_v19 = vadd.f32 1e-05, %v40_v18 }
 0x12e   :  { %88 = vrsqrt.f32 %v42_v19 }
 0x134   :  { %v87_v20 = vpop.eup %86 }
 0x135   :  { %v45_v22 = vmul.f32 %v87_v20, %v29_v6 }
 0x137   :  { %v53_v24 = vmul.f32 %v81_v21, %v45_v22 }
 0x138   :  { %v89_v25 = vpop.eup %88 }
 0x139   :  { %v46_v26 = vmul.f32 %v89_v25, %v30_v10  ;;  %v61_v27 = vadd.f32 %v82_v23, %v53_v24 }
 0x13b   :  { %v54_v28 = vmul.f32 %v81_v21, %v46_v26  ;;  %63 = vst.msk [vmem:[#allocation2] sm:$0xff] %vm19_vm0, %v61_v27 }
 0x13d   :  { %v62_v29 = vadd.f32 %v82_v23, %v54_v28 }
 0x13f   :  { %64 = vst.msk [vmem:[#allocation2 + $0x8] sm:$0xff] %vm19_vm0, %v62_v29 }
 0x140   :  { %101 = shalt.err (!%p98_p4)
}
 0x141   :  { %s102_s22 = scalar_lea.hbm %s170_s3, 256 }
 0x142   :  { %p103_p5 = scmp.ne.s32.totalorder %s170_s3, %s102_s22  ;;  %p106_p6 = scmp.lt.u32.totalorder %s102_s22, %s170_s3 }
 0x144   :  { %p108_p7 = pnand %p106_p6, %p103_p5 }
 0x146   :  { %111 = shalt.err (!%p108_p7)
}
 0x147   :  { %s115_s27 = smov 128   ;;  %s116_s28 = smov 8  }
 0x148   :  { %76 = dma.vmem_to_hbm [thread:$0]  %s71_s20, 256, %s170_s3, [#allocation3], %s115_s27, %s115_s27, %s116_s28  }
 0x149   :  { %112 = dma.done.wait [#allocation3], 256  }
 0x14a   :  { %113 = vsyncadd [#allocation3], 4294967040 }
 0x14b   :  { %80 = vsyncpa [#allocation3], 1 }

// kernel: opt_model_forward.3
= control target key start
LH: loop header
LB: loop body
LE: loop exit
PB: predicated region body
PF: predicated region fallthrough
CT: control target
= control target key end

     0   :  { %s2544_s27 = smov 0   ;;  %s2850_s0 = inlined_call_operand.vmem [shape: f32[2,8,32], index: 0, kind: input, shape index: {}, may-alias: {0,18}]   ;;  %s2851_s1 = inlined_call_operand.vmem [shape: f32[2,1,8], index: 1, kind: input, shape index: {}]   ;;  %s2852_s2 = inlined_call_operand.vmem [shape: f32[1,32], index: 2, kind: input, shape index: {}]   ;;  %s2853_s3 = inlined_call_operand.vmem [shape: f32[1,32], index: 3, kind: input, shape index: {}]   ;;  %s2854_s4 = inlined_call_operand.vmem [shape: bf16[32,32], index: 4, kind: input, shape index: {}]   ;;  %s2855_s5 = inlined_call_operand.vmem [shape: f32[1,32], index: 5, kind: input, shape index: {}]   ;;  %s2856_s6 = inlined_call_operand.vmem [shape: bf16[32,32], index: 6, kind: input, shape index: {}]   ;;  %s2857_s7 = inlined_call_operand.vmem [shape: f32[1,32], index: 7, kind: input, shape index: {}]   ;;  %s2858_s8 = inlined_call_operand.vmem [shape: bf16[32,32], index: 8, kind: input, shape index: {}]   ;;  %s2859_s9 = inlined_call_operand.vmem [shape: f32[1,32], index: 9, kind: input, shape index: {}]   ;;  %s2860_s10 = inlined_call_operand.vmem [shape: bf16[32,32], index: 10, kind: input, shape index: {}]   ;;  %s2861_s11 = inlined_call_operand.vmem [shape: f32[1,32], index: 11, kind: input, shape index: {}]   ;;  %s2862_s12 = inlined_call_operand.vmem [shape: f32[1,32], index: 12, kind: input, shape index: {}]   ;;  %s2863_s13 = inlined_call_operand.vmem [shape: f32[1,32], index: 13, kind: input, shape index: {}]   ;;  %s2864_s14 = inlined_call_operand.vmem [shape: bf16[32,64], index: 14, kind: input, shape index: {}]   ;;  %s2865_s15 = inlined_call_operand.vmem [shape: f32[1,64], index: 15, kind: input, shape index: {}]   ;;  %s2866_s16 = inlined_call_operand.vmem [shape: bf16[64,32], index: 16, kind: input, shape index: {}]   ;;  %s2867_s17 = inlined_call_operand.vmem [shape: f32[1,32], index: 17, kind: input, shape index: {}]   ;;  %s2868_s18 = inlined_call_operand.vmem [shape: f32[2,8,32], index: 18, kind: output, shape index: {}, may-alias: {0,18}]  }
   0x1   :  { %2869 = sst [smem:[#allocation2_spill]] %s2850_s0 }
   0x2   :  { %2870 = sst [smem:[#allocation3_spill]] %s2851_s1 }
   0x3   :  { %2871 = sst [smem:[#allocation4_spill]] %s2852_s2 }
   0x4 LB: > { %s2184_s28 = sadd.s32 4294967295, %s2435_s27   ;;  %p2188_p0 = scmp.ge.s32.totalorder %s2435_s27, 1  ;;  %s2435_s27 = sphi %s2544_s27, %s28_s27  }
   0x5   : > { %p519_p1 = scmp.lt.s32.totalorder %s2435_s27, 3 }
   0x7   : > { %p520_p2 = pnand %p2188_p0, %p519_p1 }
   0x8   : > { %p574_p3 = scmp.lt.s32.totalorder (!%p520_p2), %s2184_s28, 1  ;;  %vm589_vm0 = vcmask (!%p520_p2), 261120   ;;  %s2872_s19 = sld [smem:[#allocation2_spill]] (!%p520_p2)  ;;  %v2395_v7 = vld [vmem:[%s2854_s4] sm:$0xff] (!%p520_p2)   ;;  %v2437_v9 = vmov (!%p520_p2), 0.0   ;;  %v2397_v10 = vld [vmem:[%s2854_s4 + $0x8] sm:$0xff] (!%p520_p2)   ;;  %v826_v42 = vlaneseq (!%p520_p2) }
   0x9   : > { %523 = sbr.rel (%p520_p2) target bundleno = 2603 (0xa2b), region = 92  ;;  %v2396_v8 = vld [vmem:[%s2856_s6] sm:$0xff] (!%p520_p2)   ;;  %2275 = vmatprep.subr.bf16.mxu0 (!%p520_p2), %v2437_v9  ;;  %2283 = vmatprep.subr.bf16.mxu1 (!%p520_p2), %v2437_v9  ;;  %v2398_v11 = vld [vmem:[%s2856_s6 + $0x8] sm:$0xff] (!%p520_p2)   ;;  %vm2438_vm1 = vmmov (!%p520_p2), 0   ;;  %s2439_s26 = smov (!%p520_p2), 104   ;;  %vm1257_vm2 = vcmask (!%p520_p2), 64512  }
   0xa   : > { %2276 = vmatpush3.bf16.msra.mxu0 (!%p520_p2), %v2395_v7  ;;  %2284 = vmatpush3.bf16.msra.mxu1 (!%p520_p2), %v2396_v8  ;;  %v2192_v18 = vld [vmem:[%s2853_s3] ss:$0 sm:$0xff] (!%p520_p2)  ;;  %v2400_v23 = vld [vmem:[%s2858_s8 + $0x8] sm:$0xff] (!%p520_p2)   ;;  %s2440_s30 = smov (!%p520_p2), 120   ;;  %v2442_v40 = vmov (!%p520_p2), 1983009808  }
   0xb   : > { %2277 = vmatprep.subr.bf16.mxu0 (!%p520_p2), %v2437_v9  ;;  %2285 = vmatprep.subr.bf16.mxu1 (!%p520_p2), %v2437_v9  ;;  %v2399_v21 = vld [vmem:[%s2858_s8] sm:$0xff] (!%p520_p2)   ;;  %v824_v41 = vunpack.c.l.s4 (!%p520_p2), %v2442_v40  ;;  %v2443_v43 = vmov (!%p520_p2), 1934713408   ;;  %v2626_v46 = vshrl.u32 (!%p520_p2), %v826_v42, 7  ;;  %s2874_s22 = sld [smem:[#allocation3_spill]] (!%p520_p2)  ;;  %vm1536_vm7 = vcmask (!%p520_p2), 1043456  }
   0xc   : > { %2279 = vmatprep.mubr.msk.bf16.mxu0 (!%p520_p2), %vm2438_vm1, %v2437_v9  ;;  %2287 = vmatprep.mubr.msk.bf16.mxu1 (!%p520_p2), %vm2438_vm1, %v2437_v9  ;;  %v2197_v24 = vld [vmem:[%s2857_s7] ss:$0 sm:$0xff] (!%p520_p2)  ;;  %v856_v44 = vunpack.c.l.s4 (!%p520_p2), %v2443_v43  ;;  %s2448_s20 = smov (!%p520_p2), 24   ;;  %vm1867_vm8 = vcmask (!%p520_p2), 130048   ;;  %vm1869_vm9 = vcmask (!%p520_p2), 195584   ;;  %vm2076_vm10 = vcmask (!%p520_p2), 523264  }
   0xd   : > { %v2193_v34 = vld [vmem:[%s2855_s5] ss:$0 sm:$0xff] (!%p520_p2)  ;;  %v825_v45 = vunpack.c.0.s8 (!%p520_p2), %v824_v41 }
   0xe   : > { %2278 = vmatpush3.bf16.msra.mxu0 (!%p520_p2), %v2397_v10  ;;  %2286 = vmatpush3.bf16.msra.mxu1 (!%p520_p2), %v2398_v11  ;;  %v857_v49 = vunpack.c.0.s8 (!%p520_p2), %v856_v44 }
   0xf   : > { %2291 = vmatprep.subr.bf16.mxu0 (!%p520_p2), %v2437_v9  ;;  %2299 = vmatprep.subr.bf16.mxu1 (!%p520_p2), %v2437_v9  ;;  %v2629_v50 = vsub.s32 (!%p520_p2), %v825_v45, %v2626_v46 }
  0x10   : > { %s2878_s28 = smov (!%p574_p3, %s2184_s28), 1  ;;  %v2632_v56 = vsub.s32 %v857_v49, %v2626_v46 }
  0x11   : > { %s2189_s29 = sshll.u32 %s2878_s28, 3  ;;  %s580_s2 = scalar_lea.vmem %s2874_s22, %s2878_s28 }
  0x12   : > { %s577_s1 = scalar_lea.vmem %s2872_s19, %s2189_s29  ;;  %s2873_s19 = sld [smem:[#allocation4_spill]] }
  0x13   : > { %v2560_v0 = vld [vmem:[%s577_s1] sm:$0xff]  ;;  %s2441_s1 = smov 112   ;;  %s584_s21 = scalar_lea.vmem %s2868_s18, %s2189_s29 }
  0x14   : > { %v590_v1 = vsel %vm589_vm0, %v2560_v0, 0.0 }
  0x15   : > { %591 = vadd.xlane.f32.xlu0 %v590_v1 }
  0x18   : > { %v2191_v16 = vld [vmem:[%s2873_s19] ss:$0 sm:$0xff]  ;;  %s2446_s19 = smov 16  }
  0xa2   : > { %v592_v2 = vpop.xlane.xlu0 %591 }
  0xa3   : > { %v594_v3 = vmul.f32 0.03125, %v592_v2 }
  0xa5   : > { %v595_v4 = vsub.f32 %v2560_v0, %v594_v3 }
  0xa7   : > { %v596_v5 = vmul.f32 %v595_v4, %v595_v4 }
  0xa9   : > { %v597_v6 = vsel %vm589_vm0, %v596_v5, 0.0 }
  0xaa   : > { %598 = vadd.xlane.f32.xlu0 %v597_v6 }
 0x137   : > { %v599_v12 = vpop.xlane.xlu0 %598 }
 0x138   : > { %v600_v13 = vmul.f32 0.03125, %v599_v12 }
 0x13a   : > { %v601_v14 = vadd.f32 1e-05, %v600_v13 }
 0x13c   : > { %2409 = vrsqrt.f32 %v601_v14 }
 0x146   : > { %v2410_v15 = vpop.eup %2409 }
 0x147   : > { %v603_v17 = vmul.f32 %v2410_v15, %v595_v4 }
 0x149   : > { %v610_v19 = vmul.f32 %v2191_v16, %v603_v17 }
 0x14b   : > { %v617_v20 = vadd.f32 %v2192_v18, %v610_v19 }
 0x14d   : > { %v618_v22 = vpack.c.bf16 %v617_v20, %v617_v20 }
 0x14f   : > { %2280 = vmatmul.mubr.msk.bf16.vlgmr.msra.gmra.mrb[0].mxu0 %vm589_vm0, %v618_v22  ;;  %2288 = vmatmul.mubr.msk.bf16.vlgmr.msra.gmra.mrb[0].mxu1 %vm589_vm0, %v618_v22 }
 0x150   : > { %2292 = vmatpush3.bf16.msra.mxu0 %v2399_v21  ;;  %2295 = vmatprep.mubr.msk.bf16.mxu0 %vm2438_vm1, %v2437_v9 }
 0x151   : > { %2293 = vmatprep.subr.bf16.mxu0 %v2437_v9  ;;  %2301 = vmatprep.mubr.msk.bf16.mxu1 %vm2438_vm1, %v2437_v9 }
 0x154   : > { %2294 = vmatpush3.bf16.msra.mxu0 %v2400_v23 }
 0x155   : > { %2305 = vmatprep.subr.bf16.mxu0 %v2437_v9 }
 0x157   : > { %2296 = vmatmul.mubr.msk.bf16.vlgmr.msra.gmra.mrb[4].mxu0 %vm589_vm0, %v618_v22 }
 0x158   : > { %2307 = vmatprep.mubr.msk.bf16.mxu0 %vm2438_vm1, %v2437_v9 }
 0x222   : > { %v679_v25 = vpop.f32.mrb[0].mxu0  ;;  %v742_v26 = vpop.f32.mrb[0].mxu1 }
 0x223   : > { %v743_v27 = vadd.f32 %v2197_v24, %v742_v26  ;;  %v2281_v28 = vpop.f32.mrb[1].mxu0  ;;  %v2289_v29 = vpop.f32.mrb[1].mxu1  ;;  %v680_v36 = vadd.f32 %v2193_v34, %v679_v25 }
 0x224   : > { %v682_v30 = vpop.f32.mrb[2].mxu0  ;;  %v745_v31 = vpop.f32.mrb[2].mxu1 }
 0x225   : > { %964 = vrot.lane.b32.xlu0 %v743_v27, %s2439_s26  ;;  %958 = vrot.lane.b32.xlu1 %v743_v27, %s2440_s30  ;;  %v2282_v32 = vpop.f32.mrb[3].mxu0  ;;  %v2290_v33 = vpop.f32.mrb[3].mxu1 }
 0x229   : > { %961 = vrot.lane.b32.xlu1 %v743_v27, %s2441_s1 }
 0x22a   : > { %v2620_v35 = vpop.f32.mrb[4].mxu0 }
 0x22b   : > { %v2297_v37 = vpop.f32.mrb[5].mxu0 }
 0x22c   : > { %v808_v38 = vpop.f32.mrb[6].mxu0 }
 0x22d   : > { %812 = vrot.lane.b32.xlu1 %v680_v36, %s2440_s30  ;;  %v2298_v39 = vpop.f32.mrb[7].mxu0 }
 0x231   : > { %815 = vrot.lane.b32.xlu1 %v680_v36, %s2441_s1 }
 0x235   : > { %818 = vrot.lane.b32.xlu1 %v680_v36, %s2439_s26 }
 0x297   : > { %v965_v47 = vpop.permute.xlu0 %964  ;;  %v959_v48 = vpop.permute.xlu1 %958 }
 0x298   : > { %v983_v51 = vcombine.low %v959_v48, %v965_v47  ;;  %v984_v52 = vcombine.high %v959_v48, %v965_v47 }
 0x29a   : > { %v991_v57 = vrot.slane %v983_v51, %v2629_v50  ;;  %v998_v58 = vrot.slane %v984_v52, %v2629_v50 }
 0x29b   : > { %v962_v53 = vpop.permute.xlu1 %961 }
 0x29c   : > { %v967_v54 = vcombine.low %v743_v27, %v962_v53  ;;  %v968_v55 = vcombine.high %v743_v27, %v962_v53 }
 0x29e   : > { %v975_v59 = vrot.slane %v967_v54, %v2629_v50  ;;  %v982_v60 = vrot.slane %v968_v55, %v2629_v50 }
 0x29f   : > { %v813_v61 = vpop.permute.xlu1 %812 }
 0x2a0   : > { %v999_v62 = vcombine.low %v975_v59, %v991_v57  ;;  %v1000_v63 = vcombine.high %v975_v59, %v991_v57  ;;  %v1015_v1 = vcombine.low %v982_v60, %v998_v58  ;;  %v1016_v2 = vcombine.high %v982_v60, %v998_v58 }
 0x2a2   : > { %v1007_v3 = vrot.slane %v999_v62, %v2632_v56  ;;  %v1014_v4 = vrot.slane %v1000_v63, %v2632_v56  ;;  %v1023_v5 = vrot.slane %v1015_v1, %v2632_v56  ;;  %v1030_v6 = vrot.slane %v1016_v2, %v2632_v56 }
 0x2a3   : > { %v816_v7 = vpop.permute.xlu1 %815 }
 0x2a4   : > { %v1035_v8 = vcombine.low %v1007_v3, %v1014_v4  ;;  %v2207_v10 = vcombine.high %v1007_v3, %v1014_v4  ;;  %v1051_v11 = vcombine.low %v1023_v5, %v1030_v6  ;;  %v2208_v12 = vcombine.high %v1023_v5, %v1030_v6 }
 0x2a5   : > { %v821_v13 = vcombine.low %v680_v36, %v816_v7  ;;  %v822_v14 = vcombine.high %v680_v36, %v816_v7 }
 0x2a6   : > { %v1042_v15 = vrot.slane %v1035_v8, %v2629_v50  ;;  %v1050_v16 = vrot.slane %v2207_v10, %v2629_v50  ;;  %v1058_v17 = vrot.slane %v1051_v11, %v2629_v50  ;;  %v1066_v18 = vrot.slane %v2208_v12, %v2629_v50 }
 0x2a7   : > { %v819_v19 = vpop.permute.xlu1 %818  ;;  %v829_v24 = vrot.slane %v821_v13, %v2629_v50  ;;  %v836_v25 = vrot.slane %v822_v14, %v2629_v50 }
 0x2a8   : > { %v837_v20 = vcombine.low %v813_v61, %v819_v19  ;;  %v838_v21 = vcombine.high %v813_v61, %v819_v19  ;;  %v1067_v22 = vcombine.low %v1042_v15, %v1050_v16  ;;  %v1083_v23 = vcombine.low %v1058_v17, %v1066_v18 }
 0x2a9   : > { %v1068_v30 = vcombine.high %v1042_v15, %v1050_v16  ;;  %v1084_v31 = vcombine.high %v1058_v17, %v1066_v18 }
 0x2aa   : > { %v845_v26 = vrot.slane %v837_v20, %v2629_v50  ;;  %v852_v27 = vrot.slane %v838_v21, %v2629_v50  ;;  %v1075_v28 = vrot.slane %v1067_v22, %v2632_v56  ;;  %v1091_v29 = vrot.slane %v1083_v23, %v2632_v56  ;;  %v1450_v21 = vld [vmem:[%s580_s2] sm:$0x1] }
 0x2ab   : > { %v1082_v47 = vrot.slane %v1068_v30, %v2632_v56  ;;  %v1098_v48 = vrot.slane %v1084_v31, %v2632_v56  ;;  %v2444_v22 = vmov 1966171168   ;;  %vm1451_vm3 = vcmp.gt.f32.partialorder %v1450_v21, 0.5 }
 0x2ac   : > { %v853_v32 = vcombine.low %v829_v24, %v845_v26  ;;  %v854_v33 = vcombine.high %v829_v24, %v845_v26  ;;  %v869_v34 = vcombine.low %v836_v25, %v852_v27  ;;  %v870_v36 = vcombine.high %v836_v25, %v852_v27 }
 0x2ad   : > { %v1099_v37 = vcombine.low %v1075_v28, %v1091_v29  ;;  %v1100_v38 = vcombine.high %v1075_v28, %v1091_v29  ;;  %v1101_v63 = vcombine.low %v1082_v47, %v1098_v48  ;;  %v1102_v1 = vcombine.high %v1082_v47, %v1098_v48 }
 0x2ae   : > { %v861_v39 = vrot.slane %v853_v32, %v2632_v56  ;;  %v868_v40 = vrot.slane %v854_v33, %v2632_v56  ;;  %v877_v41 = vrot.slane %v869_v34, %v2632_v56  ;;  %v884_v43 = vrot.slane %v870_v36, %v2632_v56 }
 0x2af   : > { %v1253_v44 = vpack.c.bf16 %v1099_v37, %v1099_v37  ;;  %v1254_v45 = vpack.c.bf16 %v1100_v38, %v1100_v38  ;;  %v1255_v8 = vpack.c.bf16 %v1101_v63, %v1101_v63  ;;  %v1256_v10 = vpack.c.bf16 %v1102_v1, %v1102_v1 }
 0x2b0   : > { %v889_v49 = vcombine.low %v861_v39, %v868_v40  ;;  %v2205_v51 = vcombine.high %v861_v39, %v868_v40  ;;  %v905_v52 = vcombine.low %v877_v41, %v884_v43  ;;  %v2206_v53 = vcombine.high %v877_v41, %v884_v43 }
 0x2b1   : > { %v1262_v54 = vsel %vm1257_vm2, %v1253_v44, 0  ;;  %v1308_v55 = vsel %vm1257_vm2, %v1254_v45, 0  ;;  %v1354_v15 = vsel %vm1257_vm2, %v1255_v8, 0  ;;  %v1400_v16 = vsel %vm1257_vm2, %v1256_v10, 0 }
 0x2b2   : > { %v896_v57 = vrot.slane %v889_v49, %v2629_v50  ;;  %v904_v58 = vrot.slane %v2205_v51, %v2629_v50  ;;  %v912_v59 = vrot.slane %v905_v52, %v2629_v50  ;;  %v920_v60 = vrot.slane %v2206_v53, %v2629_v50  ;;  %2300 = vmatpush3.bf16.xpose.msra.mxu1 %v1262_v54 }
 0x2b3   : > { %2306 = vmatpush3.bf16.xpose.msra.mxu0 %v1308_v55  ;;  %2311 = vmatprep.subr.bf16.mxu1 %v2437_v9  ;;  %v1458_v23 = vunpack.c.l.s4 %v2444_v22  ;;  %v2445_v25 = vmov 0   ;;  %v1449_v32 = vand.u32 127, %v826_v42 }
 0x2b4   : > { %v921_v61 = vcombine.low %v896_v57, %v904_v58  ;;  %v937_v62 = vcombine.low %v912_v59, %v920_v60  ;;  %2317 = vmatprep.subr.bf16.mxu0 %v2437_v9  ;;  %v922_v2 = vcombine.high %v896_v57, %v904_v58  ;;  %v938_v3 = vcombine.high %v912_v59, %v920_v60 }
 0x2b5   : > { %v1459_v24 = vunpack.c.0.s8 %v1458_v23  ;;  %v1455_v26 = vsel %vm1451_vm3, 1, %v2445_v25  ;;  %vm1452_vm4 = vcmp.le.s32.totalorder %v1449_v32, %v2626_v46 }
 0x2b6   : > { %v929_v4 = vrot.slane %v921_v61, %v2632_v56  ;;  %v945_v5 = vrot.slane %v937_v62, %v2632_v56  ;;  %v936_v13 = vrot.slane %v922_v2, %v2632_v56  ;;  %v952_v14 = vrot.slane %v938_v3, %v2632_v56  ;;  %v2201_v3 = vld [vmem:[%s2859_s9] ss:$0 sm:$0xff] }
 0x2b7   : > { %v1456_v27 = vcombine.low %v1455_v26, %v1455_v26  ;;  %v1462_v28 = vsub.s32 %v1459_v24, %v2626_v46 }
 0x2b8   : > { %v953_v6 = vcombine.low %v929_v4, %v945_v5  ;;  %v954_v7 = vcombine.high %v929_v4, %v945_v5  ;;  %v955_v17 = vcombine.low %v936_v13, %v952_v14  ;;  %v956_v18 = vcombine.high %v936_v13, %v952_v14 }
 0x2b9   : > { %v1463_v29 = vrot.slane %v1456_v27, %v1462_v28  ;;  %v806_v4 = vadd.f32 %v2201_v3, %v2620_v35 }
 0x2ba   : > { %v1249_v11 = vpack.c.bf16 %v953_v6, %v953_v6  ;;  %v1250_v12 = vpack.c.bf16 %v954_v7, %v954_v7  ;;  %v1251_v19 = vpack.c.bf16 %v955_v17, %v955_v17  ;;  %v1252_v20 = vpack.c.bf16 %v956_v18, %v956_v18 }
 0x2bb   : > { %v1464_v30 = vcombine.low %v1463_v29, %v1463_v29 }
 0x2bc   : > { %2302 = vmatmul.mubr.msk.bf16.vlgmr.msra.gmra.mrb[4].mxu1 %vm1257_vm2, %v1249_v11  ;;  %2308 = vmatmul.mubr.msk.bf16.vlgmr.msra.gmra.mrb[8].mxu0 %vm1257_vm2, %v1250_v12 }
 0x2bd   : > { %2312 = vmatpush3.bf16.xpose.msra.mxu1 %v1354_v15  ;;  %2318 = vmatpush3.bf16.xpose.msra.mxu0 %v1400_v16  ;;  %v1471_v31 = vrot.slane %v1464_v30, %v1462_v28 }
 0x2be   : > { %2313 = vmatprep.mubr.msk.bf16.mxu1 %vm2438_vm1, %v2437_v9  ;;  %2319 = vmatprep.mubr.msk.bf16.mxu0 %vm2438_vm1, %v2437_v9 }
 0x2bf   : > { %2323 = vmatprep.subr.bf16.mxu1 %v2437_v9  ;;  %2329 = vmatprep.subr.bf16.mxu0 %v2437_v9  ;;  %v1472_v33 = vcombine.low %v1471_v31, %v1471_v31 }
 0x2c1   : > { %vm1473_vm5 = vcmp.ne.s32.totalorder %v1472_v33, 0 }
 0x2c2   : > { %vm2693_vm6 = vmand %vm1452_vm4, %vm1473_vm5 }
 0x2c4   : > { %2314 = vmatmul.mubr.msk.bf16.vlgmr.msra.gmra.mrb[8].mxu1 %vm1257_vm2, %v1251_v19  ;;  %2320 = vmatmul.mubr.msk.bf16.vlgmr.msra.gmra.mrb[12].mxu0 %vm1257_vm2, %v1252_v20 }
 0x2c5   : > { %2325 = vmatprep.mubr.msk.bf16.mxu1 %vm2438_vm1, %v2437_v9  ;;  %2331 = vmatprep.mubr.msk.bf16.mxu0 %vm2438_vm1, %v2437_v9 }
 0x38f   : > { %v1298_v34 = vpop.f32.mrb[4].mxu1  ;;  %v1344_v36 = vpop.f32.mrb[8].mxu0 }
 0x390   : > { %v1442_v38 = vmul.f32 0.35355338, %v1298_v34  ;;  %v1443_v39 = vmul.f32 0.35355338, %v1344_v36  ;;  %v2303_v40 = vpop.f32.mrb[5].mxu1  ;;  %v2309_v41 = vpop.f32.mrb[9].mxu0 }
 0x391   : > { %v1301_v43 = vpop.f32.mrb[6].mxu1  ;;  %v1347_v44 = vpop.f32.mrb[10].mxu0 }
 0x392   : > { %v2304_v45 = vpop.f32.mrb[7].mxu1  ;;  %v2310_v47 = vpop.f32.mrb[11].mxu0  ;;  %v1477_v42 = vsel %vm2693_vm6, %v1442_v38, -1e+30  ;;  %v1478_v46 = vsel %vm2693_vm6, %v1443_v39, -1e+30 }
 0x393   : > { %v1481_v48 = vsel %vm1257_vm2, %v1477_v42, -inf  ;;  %v1484_v49 = vsel %vm1257_vm2, %v1478_v46, -inf }
 0x394   : > { %1482 = vmax.xlane.f32.xlu1 %v1481_v48  ;;  %1485 = vmax.xlane.f32.xlu0 %v1484_v49 }
 0x397   : > { %v1390_v51 = vpop.f32.mrb[8].mxu1  ;;  %v1436_v52 = vpop.f32.mrb[12].mxu0 }
 0x398   : > { %v1444_v53 = vmul.f32 0.35355338, %v1390_v51  ;;  %v1445_v54 = vmul.f32 0.35355338, %v1436_v52  ;;  %v2315_v55 = vpop.f32.mrb[9].mxu1  ;;  %v2321_v57 = vpop.f32.mrb[13].mxu0 }
 0x399   : > { %v1393_v58 = vpop.f32.mrb[10].mxu1  ;;  %v1439_v59 = vpop.f32.mrb[14].mxu0 }
 0x39a   : > { %v2316_v60 = vpop.f32.mrb[11].mxu1  ;;  %v2322_v61 = vpop.f32.mrb[15].mxu0  ;;  %v1479_v62 = vsel %vm2693_vm6, %v1444_v53, -1e+30  ;;  %v1480_v63 = vsel %vm2693_vm6, %v1445_v54, -1e+30 }
 0x39b   : > { %v1487_v1 = vsel %vm1257_vm2, %v1479_v62, -inf  ;;  %v1490_v2 = vsel %vm1257_vm2, %v1480_v63, -inf }
 0x39c   : > { %1488 = vmax.xlane.f32.xlu1 %v1487_v1 }
 0x3a0   : > { %1491 = vmax.xlane.f32.xlu1 %v1490_v2 }
 0x3b1   : > { %1107 = vrot.lane.b32.xlu1 %v806_v4, %s2441_s1  ;;  %s2447_s1 = smov 8  }
 0x421   : > { %v1483_v5 = vpop.xlane.xlu1 %1482  ;;  %v1486_v6 = vpop.xlane.xlu0 %1485 }
 0x422   : > { %v1493_v7 = vsub.f32 %v1477_v42, %v1483_v5  ;;  %v1494_v8 = vsub.f32 %v1478_v46, %v1486_v6 }
 0x424   : > { %v1497_v10 = vmul.f32 1.442695, %v1493_v7  ;;  %v1499_v11 = vmul.f32 1.442695, %v1494_v8 }
 0x426   : > { %2411 = vpow2.f32 %v1497_v10 }
 0x427   : > { %2413 = vpow2.f32 %v1499_v11 }
 0x429   : > { %v1489_v15 = vpop.xlane.xlu1 %1488 }
 0x42a   : > { %v1495_v17 = vsub.f32 %v1479_v62, %v1489_v15 }
 0x42c   : > { %v1501_v19 = vmul.f32 1.442695, %v1495_v17 }
 0x42d   : > { %v1492_v16 = vpop.xlane.xlu1 %1491 }
 0x42e   : > { %v1496_v18 = vsub.f32 %v1480_v63, %v1492_v16  ;;  %2415 = vpow2.f32 %v1501_v19 }
 0x430   : > { %v2714_v12 = vpop.eup %2411  ;;  %v1503_v20 = vmul.f32 1.442695, %v1496_v18 }
 0x431   : > { %v2716_v13 = vpop.eup %2413  ;;  %v1505_v14 = vsel %vm1257_vm2, %v2714_v12, 0.0  ;;  %v1108_v25 = vpop.permute.xlu1 %1107 }
 0x432   : > { %1506 = vadd.xlane.f32.xlu0 %v1505_v14  ;;  %v1508_v35 = vsel %vm1257_vm2, %v2716_v13, 0.0  ;;  %2417 = vpow2.f32 %v1503_v20  ;;  %v1113_v28 = vcombine.low %v806_v4, %v1108_v25  ;;  %v1114_v29 = vcombine.high %v806_v4, %v1108_v25 }
 0x433   : > { %1509 = vadd.xlane.f32.xlu1 %v1508_v35 }
 0x434   : > { %v1121_v34 = vrot.slane %v1113_v28, %v2629_v50  ;;  %v1128_v36 = vrot.slane %v1114_v29, %v2629_v50 }
 0x438   : > { %v2724_v21 = vpop.eup %2415 }
 0x439   : > { %v1511_v23 = vsel %vm1257_vm2, %v2724_v21, 0.0 }
 0x43c   : > { %v2726_v22 = vpop.eup %2417 }
 0x43d   : > { %v1514_v24 = vsel %vm1257_vm2, %v2726_v22, 0.0 }
 0x444   : > { %1110 = vrot.lane.b32.xlu1 %v806_v4, %s2439_s26 }
 0x448   : > { %1104 = vrot.lane.b32.xlu0 %v806_v4, %s2440_s30 }
 0x467   : > { %1512 = vadd.xlane.f32.xlu0 %v1511_v23 }
 0x468   : > { %1515 = vadd.xlane.f32.xlu1 %v1514_v24 }
 0x4bf   : > { %v1507_v26 = vpop.xlane.xlu0 %1506 }
 0x4c0   : > { %v1510_v27 = vpop.xlane.xlu1 %1509  ;;  %2419 = vrcp.f32 %v1507_v26 }
 0x4c1   : > { %2421 = vrcp.f32 %v1510_v27 }
 0x4c3   : > { %v1105_v30 = vpop.permute.xlu0 %1104 }
 0x4c4   : > { %v1111_v31 = vpop.permute.xlu1 %1110 }
 0x4c5   : > { %v1129_v32 = vcombine.low %v1105_v30, %v1111_v31  ;;  %v1130_v33 = vcombine.high %v1105_v30, %v1111_v31  ;;  %v2401_v30 = vld [vmem:[%s2860_s10] sm:$0xff]  }
 0x4c7   : > { %v1137_v37 = vrot.slane %v1129_v32, %v2629_v50  ;;  %v1144_v38 = vrot.slane %v1130_v33, %v2629_v50 }
 0x4c9   : > { %v1145_v39 = vcombine.low %v1121_v34, %v1137_v37  ;;  %v1146_v40 = vcombine.high %v1121_v34, %v1137_v37  ;;  %v1161_v41 = vcombine.low %v1128_v36, %v1144_v38  ;;  %v1162_v43 = vcombine.high %v1128_v36, %v1144_v38 }
 0x4ca   : > { %v2420_v63 = vpop.eup %2419 }
 0x4cb   : > { %v1153_v44 = vrot.slane %v1145_v39, %v2632_v56  ;;  %v1160_v45 = vrot.slane %v1146_v40, %v2632_v56  ;;  %v1169_v47 = vrot.slane %v1161_v41, %v2632_v56  ;;  %v1176_v42 = vrot.slane %v1162_v43, %v2632_v56  ;;  %v2422_v3 = vpop.eup %2421 }
 0x4cc   : > { %v1521_v8 = vmul.f32 %v2420_v63, %v2714_v12  ;;  %v1522_v10 = vmul.f32 %v2422_v3, %v2716_v13 }
 0x4cd   : > { %v1181_v46 = vcombine.low %v1153_v44, %v1160_v45  ;;  %v2209_v48 = vcombine.high %v1153_v44, %v1160_v45  ;;  %v1197_v49 = vcombine.low %v1169_v47, %v1176_v42  ;;  %v2210_v51 = vcombine.high %v1169_v47, %v1176_v42 }
 0x4ce   : > { %v1525_v18 = vpack.c.bf16 %v1521_v8, %v1521_v8  ;;  %v1526_v19 = vpack.c.bf16 %v1522_v10, %v1522_v10 }
 0x4cf   : > { %v1188_v52 = vrot.slane %v1181_v46, %v2629_v50  ;;  %v1196_v53 = vrot.slane %v2209_v48, %v2629_v50  ;;  %v1204_v54 = vrot.slane %v1197_v49, %v2629_v50  ;;  %v1212_v55 = vrot.slane %v2210_v51, %v2629_v50 }
 0x4d1   : > { %v1213_v57 = vcombine.low %v1188_v52, %v1196_v53  ;;  %v1214_v58 = vcombine.high %v1188_v52, %v1196_v53  ;;  %v1229_v59 = vcombine.low %v1204_v54, %v1212_v55  ;;  %v1230_v60 = vcombine.high %v1204_v54, %v1212_v55 }
 0x4d3   : > { %v1221_v61 = vrot.slane %v1213_v57, %v2632_v56  ;;  %v1228_v62 = vrot.slane %v1214_v58, %v2632_v56  ;;  %v1237_v1 = vrot.slane %v1229_v59, %v2632_v56  ;;  %v1244_v2 = vrot.slane %v1230_v60, %v2632_v56  ;;  %v2402_v60 = vld [vmem:[%s2860_s10 + $0x8] sm:$0xff]  }
 0x4d5   : > { %v1245_v4 = vcombine.low %v1221_v61, %v1237_v1  ;;  %v1246_v5 = vcombine.high %v1221_v61, %v1237_v1  ;;  %v1247_v6 = vcombine.low %v1228_v62, %v1244_v2  ;;  %v1248_v7 = vcombine.high %v1228_v62, %v1244_v2 }
 0x4d7   : > { %v1529_v11 = vpack.c.bf16 %v1245_v4, %v1245_v4  ;;  %v1530_v14 = vpack.c.bf16 %v1246_v5, %v1246_v5  ;;  %v1531_v16 = vpack.c.bf16 %v1247_v6, %v1247_v6  ;;  %v1532_v17 = vpack.c.bf16 %v1248_v7, %v1248_v7 }
 0x4d9   : > { %v1538_v35 = vsel %vm1536_vm7, %v1529_v11, 0  ;;  %v1584_v15 = vsel %vm1536_vm7, %v1530_v14, 0  ;;  %v1630_v12 = vsel %vm1536_vm7, %v1531_v16, 0  ;;  %v1676_v13 = vsel %vm1536_vm7, %v1532_v17, 0 }
 0x4da   : > { %2324 = vmatpush3.bf16.msra.mxu1 %v1538_v35  ;;  %2330 = vmatpush3.bf16.msra.mxu0 %v1584_v15 }
 0x4db   : > { %2335 = vmatprep.subr.bf16.mxu1 %v2437_v9  ;;  %2341 = vmatprep.subr.bf16.mxu0 %v2437_v9 }
 0x4dd   : > { %2326 = vmatmul.mubr.msk.bf16.vlgmr.msra.gmra.mrb[12].mxu1 %vm1257_vm2, %v1525_v18  ;;  %2332 = vmatmul.mubr.msk.bf16.vlgmr.msra.gmra.mrb[16].mxu0 %vm1257_vm2, %v1526_v19 }
 0x4de   : > { %2336 = vmatpush3.bf16.msra.mxu1 %v1630_v12  ;;  %2342 = vmatpush3.bf16.msra.mxu0 %v1676_v13 }
 0x4df   : > { %2337 = vmatprep.mubr.msk.bf16.mxu1 %vm2438_vm1, %v2437_v9  ;;  %2343 = vmatprep.mubr.msk.bf16.mxu0 %vm2438_vm1, %v2437_v9 }
 0x4e0   : > { %2347 = vmatprep.subr.bf16.mxu1 %v2437_v9  ;;  %2355 = vmatprep.subr.bf16.mxu0 %v2437_v9 }
 0x4f4   : > { %v1513_v20 = vpop.xlane.xlu0 %1512 }
 0x4f5   : > { %2423 = vrcp.f32 %v1513_v20  ;;  %v1516_v23 = vpop.xlane.xlu1 %1515 }
 0x4f6   : > { %2425 = vrcp.f32 %v1516_v23 }
 0x4ff   : > { %v2424_v24 = vpop.eup %2423 }
 0x500   : > { %v2426_v25 = vpop.eup %2425  ;;  %v1523_v26 = vmul.f32 %v2424_v24, %v2724_v21 }
 0x501   : > { %v1524_v27 = vmul.f32 %v2426_v25, %v2726_v22 }
 0x502   : > { %v1527_v28 = vpack.c.bf16 %v1523_v26, %v1523_v26 }
 0x503   : > { %v1528_v29 = vpack.c.bf16 %v1524_v27, %v1524_v27 }
 0x504   : > { %2338 = vmatmul.mubr.msk.bf16.vlgmr.msra.gmra.mrb[16].mxu1 %vm1257_vm2, %v1527_v28 }
 0x505   : > { %2344 = vmatmul.mubr.msk.bf16.vlgmr.msra.gmra.mrb[20].mxu0 %vm1257_vm2, %v1528_v29  ;;  %2351 = vmatprep.mubr.msk.bf16.mxu1 %vm2438_vm1, %v2437_v9  ;;  %v2221_v29 = vld [vmem:[%s2861_s11] ss:$0 sm:$0xff] }
 0x506   : > { %2359 = vmatprep.mubr.msk.bf16.mxu0 %vm2438_vm1, %v2437_v9  ;;  %2348 = vmatpush3.bf16.msra.mxu1 %v2401_v30 }
 0x507   : > { %2349 = vmatprep.subr.bf16.mxu1 %v2437_v9 }
 0x50a   : > { %2350 = vmatpush3.bf16.msra.mxu1 %v2402_v60 }
 0x50b   : > { %2363 = vmatprep.subr.bf16.mxu1 %v2437_v9 }
 0x5b0   : > { %v1574_v21 = vpop.f32.mrb[12].mxu1  ;;  %v1620_v22 = vpop.f32.mrb[16].mxu0 }
 0x5b1   : > { %v2327_v31 = vpop.f32.mrb[13].mxu1  ;;  %v2333_v32 = vpop.f32.mrb[17].mxu0 }
 0x5b2   : > { %v1577_v33 = vpop.f32.mrb[14].mxu1  ;;  %v1623_v34 = vpop.f32.mrb[18].mxu0 }
 0x5b3   : > { %v2328_v36 = vpop.f32.mrb[15].mxu1  ;;  %v2334_v37 = vpop.f32.mrb[19].mxu0 }
 0x5d7   : > { %v1666_v38 = vpop.f32.mrb[16].mxu1 }
 0x5d8   : > { %v1718_v39 = vcombine.low %v1574_v21, %v1666_v38  ;;  %v1719_v40 = vcombine.high %v1574_v21, %v1666_v38  ;;  %v1712_v41 = vpop.f32.mrb[20].mxu0  ;;  %v2339_v43 = vpop.f32.mrb[17].mxu1 }
 0x5d9   : > { %v1734_v44 = vcombine.low %v1620_v22, %v1712_v41  ;;  %v1735_v45 = vcombine.high %v1620_v22, %v1712_v41  ;;  %v2345_v47 = vpop.f32.mrb[21].mxu0  ;;  %v1669_v42 = vpop.f32.mrb[18].mxu1  ;;  %v2403_v41 = vld [vmem:[%s2864_s14] sm:$0xff]  }
 0x5da   : > { %v1726_v46 = vrot.slane %v1718_v39, %v2629_v50  ;;  %v1733_v48 = vrot.slane %v1719_v40, %v2629_v50  ;;  %v1715_v49 = vpop.f32.mrb[22].mxu0  ;;  %v2340_v51 = vpop.f32.mrb[19].mxu1  ;;  %2356 = vmatpush3.bf16.msra.mxu0 %v2403_v41  ;;  %v2405_v43 = vld [vmem:[%s2866_s16] sm:$0xff]  }
 0x5db   : > { %v1742_v52 = vrot.slane %v1734_v44, %v2629_v50  ;;  %v1749_v53 = vrot.slane %v1735_v45, %v2629_v50  ;;  %v2346_v54 = vpop.f32.mrb[23].mxu0  ;;  %2357 = vmatprep.subr.bf16.mxu0 %v2437_v9  ;;  %v2406_v44 = vld [vmem:[%s2866_s16 + $0x8] sm:$0xff]   ;;  %v2226_v51 = vld [vmem:[%s2863_s13] ss:$0 sm:$0xff] }
 0x5dd   : > { %v1750_v55 = vcombine.low %v1726_v46, %v1742_v52  ;;  %v1751_v57 = vcombine.high %v1726_v46, %v1742_v52  ;;  %v1766_v58 = vcombine.low %v1733_v48, %v1749_v53  ;;  %v1767_v59 = vcombine.high %v1733_v48, %v1749_v53  ;;  %v2225_v48 = vld [vmem:[%s2862_s12] ss:$0 sm:$0xff] }
 0x5df   : > { %v1758_v61 = vrot.slane %v1750_v55, %v2632_v56  ;;  %v1765_v62 = vrot.slane %v1751_v57, %v2632_v56  ;;  %v1774_v63 = vrot.slane %v1766_v58, %v2632_v56  ;;  %v1781_v1 = vrot.slane %v1767_v59, %v2632_v56  ;;  %v2407_v55 = vld [vmem:[%s2866_s16 + $0x10] sm:$0xff]   ;;  %v2408_v57 = vld [vmem:[%s2866_s16 + $0x18] sm:$0xff]   ;;  %v2227_v58 = vld [vmem:[%s2865_s15] ss:$0 sm:$0xff] }
 0x5e1   : > { %v1786_v2 = vcombine.low %v1758_v61, %v1765_v62  ;;  %v2219_v3 = vcombine.high %v1758_v61, %v1765_v62  ;;  %v1802_v4 = vcombine.low %v1774_v63, %v1781_v1  ;;  %v2220_v5 = vcombine.high %v1774_v63, %v1781_v1 }
 0x5e3   : > { %v1793_v6 = vrot.slane %v1786_v2, %v2629_v50  ;;  %v1801_v7 = vrot.slane %v2219_v3, %v2629_v50  ;;  %v1809_v8 = vrot.slane %v1802_v4, %v2629_v50  ;;  %v1817_v10 = vrot.slane %v2220_v5, %v2629_v50 }
 0x5e5   : > { %v1819_v11 = vcombine.high %v1793_v6, %v1801_v7  ;;  %v1835_v14 = vcombine.high %v1809_v8, %v1817_v10  ;;  %v1818_v35 = vcombine.low %v1793_v6, %v1801_v7  ;;  %v1834_v15 = vcombine.low %v1809_v8, %v1817_v10 }
 0x5e7   : > { %v1833_v16 = vrot.slane %v1819_v11, %v2632_v56  ;;  %v1849_v17 = vrot.slane %v1835_v14, %v2632_v56  ;;  %v1826_v18 = vrot.slane %v1818_v35, %v2632_v56  ;;  %v1842_v19 = vrot.slane %v1834_v15, %v2632_v56 }
 0x5e9   : > { %v1852_v12 = vcombine.low %v1833_v16, %v1849_v17  ;;  %v1851_v13 = vcombine.high %v1826_v18, %v1842_v19  ;;  %v1853_v20 = vcombine.high %v1833_v16, %v1849_v17  ;;  %v1850_v23 = vcombine.low %v1826_v18, %v1842_v19 }
 0x5eb   : > { %1859 = vrot.lane.b32.xlu1 %v1852_v12, %s2446_s19  ;;  %1855 = vrot.lane.b32.xlu0 %v1851_v13, %s2447_s1 }
 0x5ef   : > { %1863 = vrot.lane.b32.xlu0 %v1853_v20, %s2448_s20 }
 0x65d   : > { %v1856_v50 = vpop.permute.xlu0 %1855  ;;  %v1860_v24 = vpop.permute.xlu1 %1859 }
 0x65e   : > { %v1866_v25 = vsel %vm1257_vm2, %v1850_v23, %v1856_v50 }
 0x65f   : > { %v1868_v27 = vsel %vm1867_vm8, %v1866_v25, %v1860_v24 }
 0x661   : > { %v1864_v26 = vpop.permute.xlu0 %1863 }
 0x662   : > { %v1870_v28 = vsel %vm1869_vm9, %v1868_v27, %v1864_v26 }
 0x663   : > { %v1871_v56 = vpack.c.bf16 %v1870_v28, %v1870_v28 }
 0x665   : > { %2352 = vmatmul.mubr.msk.bf16.vlgmr.msra.gmra.mrb[20].mxu1 %vm589_vm0, %v1871_v56 }
 0x666   : > { %2371 = vmatprep.mubr.msk.bf16.mxu1 %vm2438_vm1, %v2437_v9  ;;  %2364 = vmatpush3.bf16.msra.mxu1 %v2405_v43 }
 0x667   : > { %2365 = vmatprep.subr.bf16.mxu1 %v2437_v9 }
 0x66a   : > { %2366 = vmatpush3.bf16.msra.mxu1 %v2406_v44 }
 0x66b   : > { %2367 = vmatprep.subr.bf16.mxu1 %v2437_v9 }
 0x66e   : > { %2368 = vmatpush3.bf16.msra.mxu1 %v2407_v55 }
 0x66f   : > { %2369 = vmatprep.subr.bf16.mxu1 %v2437_v9  ;;  %v2231_v9 = vld [vmem:[%s2867_s17] ss:$0 sm:$0xff] }
 0x672   : > { %2370 = vmatpush3.bf16.msra.mxu1 %v2408_v57 }
 0x738   : > { %v1932_v30 = vpop.f32.mrb[20].mxu1 }
 0x739   : > { %v1933_v21 = vadd.f32 %v2221_v29, %v1932_v30  ;;  %v2353_v22 = vpop.f32.mrb[21].mxu1 }
 0x73a   : > { %v1935_v31 = vpop.f32.mrb[22].mxu1 }
 0x73b   : > { %v1938_v32 = vadd.f32 %v1933_v21, %v2560_v0  ;;  %v2354_v33 = vpop.f32.mrb[23].mxu1  ;;  %v2404_v0 = vld [vmem:[%s2864_s14 + $0x8] sm:$0xff]  }
 0x73c   : > { %2358 = vmatpush3.bf16.msra.mxu0 %v2404_v0 }
 0x73d   : > { %v1941_v34 = vsel %vm589_vm0, %v1938_v32, 0.0 }
 0x73e   : > { %1942 = vadd.xlane.f32.xlu1 %v1941_v34 }
 0x7cb   : > { %v1943_v36 = vpop.xlane.xlu1 %1942 }
 0x7cc   : > { %v1944_v37 = vmul.f32 0.03125, %v1943_v36 }
 0x7ce   : > { %v1945_v38 = vsub.f32 %v1938_v32, %v1944_v37 }
 0x7d0   : > { %v1946_v39 = vmul.f32 %v1945_v38, %v1945_v38 }
 0x7d2   : > { %v1947_v40 = vsel %vm589_vm0, %v1946_v39, 0.0 }
 0x7d3   : > { %1948 = vadd.xlane.f32.xlu0 %v1947_v40 }
 0x860   : > { %v1949_v45 = vpop.xlane.xlu0 %1948 }
 0x861   : > { %v1950_v47 = vmul.f32 0.03125, %v1949_v45 }
 0x863   : > { %v1951_v42 = vadd.f32 1e-05, %v1950_v47 }
 0x865   : > { %2427 = vrsqrt.f32 %v1951_v42 }
 0x86f   : > { %v2428_v46 = vpop.eup %2427 }
 0x870   : > { %v1953_v49 = vmul.f32 %v2428_v46, %v1945_v38 }
 0x872   : > { %v1960_v52 = vmul.f32 %v2225_v48, %v1953_v49 }
 0x874   : > { %v1967_v53 = vadd.f32 %v2226_v51, %v1960_v52 }
 0x876   : > { %v1968_v54 = vpack.c.bf16 %v1967_v53, %v1967_v53 }
 0x878   : > { %2360 = vmatmul.mubr.msk.bf16.vlgmr.msra.gmra.mrb[24].mxu0 %vm589_vm0, %v1968_v54 }
 0x94b   : > { %v2029_v59 = vpop.f32.mrb[24].mxu0 }
 0x94c   : > { %v2030_v60 = vadd.f32 %v2227_v58, %v2029_v59  ;;  %v2361_v61 = vpop.f32.mrb[25].mxu0 }
 0x94d   : > { %v2032_v62 = vpop.f32.mrb[26].mxu0 }
 0x94e   : > { %v2035_v63 = vmax.f32 %v2030_v60, 0.0  ;;  %v2362_v1 = vpop.f32.mrb[27].mxu0 }
 0x950   : > { %v2036_v2 = vpack.c.bf16 %v2035_v63, %v2035_v63 }
 0x952   : > { %2372 = vmatmul.mubr.msk.bf16.vlgmr.msra.gmra.mrb[24].mxu1 %vm2076_vm10, %v2036_v2 }
 0xa25   : > { %v2114_v3 = vpop.f32.mrb[24].mxu1 }
 0xa26   : > { %v2115_v4 = vadd.f32 %v2231_v9, %v2114_v3  ;;  %v2373_v5 = vpop.f32.mrb[25].mxu1 }
 0xa27   : > { %v2117_v6 = vpop.f32.mrb[26].mxu1 }
 0xa28   : > { %v2120_v7 = vadd.f32 %v2115_v4, %v1938_v32  ;;  %v2374_v8 = vpop.f32.mrb[27].mxu1 }
 0xa2a   : > { %2121 = vst.msk [vmem:[%s584_s21] sm:$0xff] %vm589_vm0, %v2120_v7 }
 0xa2b PF: > { %s28_s27 = sadd.s32 1, %s2435_s27  }
 0xa2c   : > { %p25_p4 = scmp.ge.s32.totalorder %s28_s27, 4  }
 0xa2e   :  { %27 = sbr.rel (!%p25_p4) target bundleno = 4 (0x4), region = 125 }

</bundles_post_ra>
